<compile_context>
chip_gen: v6e
topology: v6e:2x2x1
jax: 0.10.0
libtpu: 0.0.40
codegen_flags: <defaults>
</compile_context>

<pallas_src>
import functools
import math

import jax
import jax.numpy as jnp
from jax import lax
from jax.experimental import pallas as pl
from jax.experimental.pallas import tpu as pltpu


# -----------------------------------------------------------------------------
# Fused kernel: projections + multi-head cross-attention + output projection,
# for a block of `bt` batches in one grid step.
# -----------------------------------------------------------------------------
def _fused_cross_attn_kernel(x1_ref, x2_ref, wq_ref, bq_ref, wkv_ref, bkv_ref,
                             wo_ref, bo_ref, o_ref, *, bt, l1, l2, nh, hd):
    H = nh * hd

    # Fused input projections over the whole (bt*L, D) row blocks.
    # 1/sqrt(hd) is already folded into wq_ref / bq_ref.
    q = jnp.dot(x1_ref[...], wq_ref[...],
                preferred_element_type=jnp.float32) + bq_ref[...]      # (bt*L1, H)
    kv = jnp.dot(x2_ref[...], wkv_ref[...],
                 preferred_element_type=jnp.float32) + bkv_ref[...]    # (bt*L2, 2H)
    k = kv[:, :H]                                                      # (bt*L2, H)
    v = kv[:, H:]                                                      # (bt*L2, H)

    # Per-(batch, head) attention, statically unrolled; all intermediates stay
    # in registers.  Head contexts are concatenated along lanes, batch contexts
    # along sublanes — no VMEM scratch round trip before the output matmul.
    ctx_rows = []
    for b in range(bt):
        qr = slice(b * l1, (b + 1) * l1)
        kr = slice(b * l2, (b + 1) * l2)
        head_ctx = []
        for h in range(nh):
            cs = slice(h * hd, (h + 1) * hd)
            qh = q[qr, cs]                                             # (L1, hd)
            kh = k[kr, cs]                                             # (L2, hd)
            vh = v[kr, cs]                                             # (L2, hd)
            # Contract both last dims: no kh.T relayout.
            s = lax.dot_general(qh, kh, (((1,), (1,)), ((), ())),
                                preferred_element_type=jnp.float32)    # (L1, L2)
            s = s - jnp.max(s, axis=-1, keepdims=True)
            p = jnp.exp(s)
            p = p * pl.reciprocal(jnp.sum(p, axis=-1, keepdims=True),
                                  approx=True)
            head_ctx.append(jnp.dot(p, vh,
                                    preferred_element_type=jnp.float32))
        ctx_rows.append(jnp.concatenate(head_ctx, axis=-1))            # (L1, H)
    ctx = jnp.concatenate(ctx_rows, axis=0)                            # (bt*L1, H)

    # Fused output projection (out_proj @ fc_out folded on the host).
    out = jnp.dot(ctx, wo_ref[...],
                  preferred_element_type=jnp.float32) + bo_ref[...]    # (bt*L1, H)
    o_ref[...] = out.astype(o_ref.dtype)


def cross_attention_forward(fused, x1, x2, *, batch_block=None):
    """Fused eval-mode forward of CrossAttention.  One pallas_call total."""
    B, L1, D1 = x1.shape
    Bx, L2, D2 = x2.shape
    assert B == Bx
    H = fused["wo_f"].shape[0]
    nh = fused["num_heads"]
    hd = H // nh
    assert nh * hd == H

    # Default: all batches in one grid step (toy B/L -> step overhead dominates).
    bt = B if batch_block is None else batch_block
    assert B % bt == 0

    # Flatten batch into the row axis on the host (free metadata reshape) so the
    # kernel works on wide (bt*L, .) slabs instead of 1-batch strips.
    x1f = x1.reshape(B * L1, D1)
    x2f = x2.reshape(B * L2, D2)

    kern = functools.partial(_fused_cross_attn_kernel,
                             bt=bt, l1=L1, l2=L2, nh=nh, hd=hd)

    out_flat = pl.pallas_call(
        kern,
        out_shape=jax.ShapeDtypeStruct((B * L1, H), x1.dtype),
        grid=(B // bt,),
        in_specs=[
            pl.BlockSpec((bt * L1, D1), lambda i: (i, 0)),     # x1 rows
            pl.BlockSpec((bt * L2, D2), lambda i: (i, 0)),     # x2 rows
            pl.BlockSpec((D1, H), lambda i: (0, 0)),           # Wq   (VMEM-resident)
            pl.BlockSpec((1, H), lambda i: (0, 0)),            # bq
            pl.BlockSpec((D2, 2 * H), lambda i: (0, 0)),       # Wkv
            pl.BlockSpec((1, 2 * H), lambda i: (0, 0)),        # bkv
            pl.BlockSpec((H, H), lambda i: (0, 0)),            # Wo
            pl.BlockSpec((1, H), lambda i: (0, 0)),            # bo
        ],
        out_specs=pl.BlockSpec((bt * L1, H), lambda i: (i, 0)),
        compiler_params=pltpu.CompilerParams(
            dimension_semantics=("parallel",),
            vmem_limit_bytes=32 * 1024 * 1024),                # explicit VMEM budget
    )(x1f, x2f,
      fused["wq_f"], fused["bq_f"].reshape(1, H),
      fused["wkv_f"], fused["bkv_f"].reshape(1, 2 * H),
      fused["wo_f"], fused["bo_f"].reshape(1, H))

    return out_flat.reshape(B, L1, H)


# -----------------------------------------------------------------------------
# Parameters (same shapes as the PyTorch module) + one-time algebraic folding
# -----------------------------------------------------------------------------
def init_params(key, input_dim1, input_dim2, hidden_dim, num_heads):
    ks = jax.random.split(key, 14)
    s = 0.02

    def w(k, shape):
        return jax.random.normal(k, shape, dtype=jnp.float32) * s

    def b(k, n):
        return jax.random.normal(k, (n,), dtype=jnp.float32) * s

    H = hidden_dim
    return {
        "num_heads": num_heads,
        # fc1 / fc2
        "fc1_w": w(ks[0], (input_dim1, H)), "fc1_b": b(ks[1], H),
        "fc2_w": w(ks[2], (input_dim2, H)), "fc2_b": b(ks[3], H),
        # nn.MultiheadAttention in_proj (q from query, k/v from key/value) + out_proj
        "wq": w(ks[4], (H, H)), "bq": b(ks[5], H),
        "wk": w(ks[6], (H, H)), "bk": b(ks[7], H),
        "wv": w(ks[8], (H, H)), "bv": b(ks[9], H),
        "wo": w(ks[10], (H, H)), "bo": b(ks[11], H),
        # fc_out
        "fc_out_w": w(ks[12], (H, H)), "fc_out_b": b(ks[13], H),
    }


def fuse_params(p):
    """Fold chained bias-linears and the softmax scale (done once on the host).

    Valid because fc1/fc2 -> in_proj and out_proj -> fc_out have no nonlinearity
    between them and dropout is identity in eval mode.  The 1/sqrt(head_dim)
    factor is linear in q, so folding it into Wq/bq is exact.
    """
    H = p["fc1_w"].shape[1]
    nh = p["num_heads"]
    hd = H // nh
    scale = 1.0 / math.sqrt(hd)

    wq_f = (p["fc1_w"] @ p["wq"]) * scale                              # (D1, H)
    bq_f = (p["fc1_b"] @ p["wq"] + p["bq"]) * scale                    # (H,)
    wkv_f = jnp.concatenate([p["fc2_w"] @ p["wk"],
                             p["fc2_w"] @ p["wv"]], axis=1)            # (D2, 2H)
    bkv_f = jnp.concatenate([p["fc2_b"] @ p["wk"] + p["bk"],
                             p["fc2_b"] @ p["wv"] + p["bv"]], axis=0)  # (2H,)
    wo_f = p["wo"] @ p["fc_out_w"]                                     # (H, H)
    bo_f = p["bo"] @ p["fc_out_w"] + p["fc_out_b"]                     # (H,)
    return {"num_heads": nh,
            "wq_f": wq_f, "bq_f": bq_f,
            "wkv_f": wkv_f, "bkv_f": bkv_f,
            "wo_f": wo_f, "bo_f": bo_f}


# -----------------------------------------------------------------------------
# Pure-JAX reference (unfused, mirrors the PyTorch eval-mode forward)
# -----------------------------------------------------------------------------
def reference_forward(p, x1, x2):
    B, L1, _ = x1.shape
    _, L2, _ = x2.shape
    H = p["fc1_w"].shape[1]
    nh = p["num_heads"]
    hd = H // nh
    q1 = x1 @ p["fc1_w"] + p["fc1_b"]
    q2 = x2 @ p["fc2_w"] + p["fc2_b"]
    q = q1 @ p["wq"] + p["bq"]
    k = q2 @ p["wk"] + p["bk"]
    v = q2 @ p["wv"] + p["bv"]
    q = q.reshape(B, L1, nh, hd).transpose(0, 2, 1, 3)
    k = k.reshape(B, L2, nh, hd).transpose(0, 2, 1, 3)
    v = v.reshape(B, L2, nh, hd).transpose(0, 2, 1, 3)
    s = jnp.einsum("bhqd,bhkd->bhqk", q, k) * (1.0 / math.sqrt(hd))
    a = jax.nn.softmax(s, axis=-1)
    ctx = jnp.einsum("bhqk,bhkd->bhqd", a, v)
    ctx = ctx.transpose(0, 2, 1, 3).reshape(B, L1, H)
    out = ctx @ p["wo"] + p["bo"]
    return out @ p["fc_out_w"] + p["fc_out_b"]


# -----------------------------------------------------------------------------
if __name__ == "__main__":
    B, L1, L2 = 2, 8, 8
    D1, D2, H, NH = 16, 32, 32, 8

    key = jax.random.PRNGKey(0)
    kp, k1, k2 = jax.random.split(key, 3)
    params = init_params(kp, D1, D2, H, NH)
    fused = fuse_params(params)

    x1 = jax.random.normal(k1, (B, L1, D1), dtype=jnp.float32)
    x2 = jax.random.normal(k2, (B, L2, D2), dtype=jnp.float32)

    out = cross_attention_forward(fused, x1, x2)
    out = jax.block_until_ready(out)

    assert out.shape == (B, L1, H), out.shape
    assert jnp.all(jnp.isfinite(out))

    ref = reference_forward(params, x1, x2)
    max_err = float(jnp.max(jnp.abs(out - ref)))
    assert jnp.allclose(out, ref, rtol=1e-2, atol=1e-3), max_err

    print("KERNEL_OK")
</pallas_src>

<mosaic_0001>
module attributes {stable_mosaic.version = 11 : i64} {
  func.func @_fused_cross_attn_kernel(%arg0: i32, %arg1: memref<16x16xf32, #tpu.memory_space<vmem>>, %arg2: memref<16x32xf32, #tpu.memory_space<vmem>>, %arg3: memref<16x32xf32, #tpu.memory_space<vmem>>, %arg4: memref<1x32xf32, #tpu.memory_space<vmem>>, %arg5: memref<32x64xf32, #tpu.memory_space<vmem>>, %arg6: memref<1x64xf32, #tpu.memory_space<vmem>>, %arg7: memref<32x32xf32, #tpu.memory_space<vmem>>, %arg8: memref<1x32xf32, #tpu.memory_space<vmem>>, %arg9: memref<16x32xf32, #tpu.memory_space<vmem>>) attributes {dimension_semantics = [#tpu.dimension_semantics<parallel>], iteration_bounds = array<i64: 1>, scalar_prefetch = 0 : i64, scratch_operands = 0 : i64, tpu.core_type = #tpu.core_type<tc>, window_params = [{transform_indices = @transform_0, window_bounds = array<i64: 16, 16>}, {transform_indices = @transform_1, window_bounds = array<i64: 16, 32>}, {pipeline_mode = #tpu.pipeline_mode<synchronous>, transform_indices = @transform_2, window_bounds = array<i64: 16, 32>}, {pipeline_mode = #tpu.pipeline_mode<synchronous>, transform_indices = @transform_3, window_bounds = array<i64: 1, 32>}, {pipeline_mode = #tpu.pipeline_mode<synchronous>, transform_indices = @transform_4, window_bounds = array<i64: 32, 64>}, {pipeline_mode = #tpu.pipeline_mode<synchronous>, transform_indices = @transform_5, window_bounds = array<i64: 1, 64>}, {pipeline_mode = #tpu.pipeline_mode<synchronous>, transform_indices = @transform_6, window_bounds = array<i64: 32, 32>}, {pipeline_mode = #tpu.pipeline_mode<synchronous>, transform_indices = @transform_7, window_bounds = array<i64: 1, 32>}, {transform_indices = @transform_8, window_bounds = array<i64: 16, 32>}]} {
    %c0 = arith.constant 0 : index
    %c0_0 = arith.constant 0 : index
    %0 = vector.load %arg1[%c0, %c0_0] : memref<16x16xf32, #tpu.memory_space<vmem>>, vector<16x16xf32>
    %c0_1 = arith.constant 0 : index
    %c0_2 = arith.constant 0 : index
    %1 = vector.load %arg3[%c0_1, %c0_2] : memref<16x32xf32, #tpu.memory_space<vmem>>, vector<16x32xf32>
    %cst = arith.constant dense<0.000000e+00> : vector<16x32xf32>
    %2 = tpu.matmul %0, %1, %cst {dimension_numbers = #tpu.dot_dimension_numbers<[1], [0], [0], [1], [0, 0, 1, 1], [], []>} : vector<16x16xf32>, vector<16x32xf32>, vector<16x32xf32> -> vector<16x32xf32>
    %c0_3 = arith.constant 0 : index
    %c0_4 = arith.constant 0 : index
    %3 = vector.load %arg4[%c0_3, %c0_4] : memref<1x32xf32, #tpu.memory_space<vmem>>, vector<1x32xf32>
    %4 = vector.broadcast %3 : vector<1x32xf32> to vector<16x32xf32>
    %5 = arith.addf %2, %4 : vector<16x32xf32>
    %c0_5 = arith.constant 0 : index
    %c0_6 = arith.constant 0 : index
    %6 = vector.load %arg2[%c0_5, %c0_6] : memref<16x32xf32, #tpu.memory_space<vmem>>, vector<16x32xf32>
    %c0_7 = arith.constant 0 : index
    %c0_8 = arith.constant 0 : index
    %7 = vector.load %arg5[%c0_7, %c0_8] : memref<32x64xf32, #tpu.memory_space<vmem>>, vector<32x64xf32>
    %cst_9 = arith.constant dense<0.000000e+00> : vector<16x64xf32>
    %8 = tpu.matmul %6, %7, %cst_9 {dimension_numbers = #tpu.dot_dimension_numbers<[1], [0], [0], [1], [0, 0, 1, 1], [], []>} : vector<16x32xf32>, vector<32x64xf32>, vector<16x64xf32> -> vector<16x64xf32>
    %c0_10 = arith.constant 0 : index
    %c0_11 = arith.constant 0 : index
    %9 = vector.load %arg6[%c0_10, %c0_11] : memref<1x64xf32, #tpu.memory_space<vmem>>, vector<1x64xf32>
    %10 = vector.broadcast %9 : vector<1x64xf32> to vector<16x64xf32>
    %11 = arith.addf %8, %10 : vector<16x64xf32>
    %12 = vector.extract_strided_slice %11 {offsets = [0, 0], sizes = [16, 32], strides = [1, 1]} : vector<16x64xf32> to vector<16x32xf32>
    %13 = vector.extract_strided_slice %11 {offsets = [0, 32], sizes = [16, 32], strides = [1, 1]} : vector<16x64xf32> to vector<16x32xf32>
    %14 = vector.extract_strided_slice %5 {offsets = [0, 0], sizes = [8, 4], strides = [1, 1]} : vector<16x32xf32> to vector<8x4xf32>
    %15 = vector.extract_strided_slice %12 {offsets = [0, 0], sizes = [8, 4], strides = [1, 1]} : vector<16x32xf32> to vector<8x4xf32>
    %16 = vector.extract_strided_slice %13 {offsets = [0, 0], sizes = [8, 4], strides = [1, 1]} : vector<16x32xf32> to vector<8x4xf32>
    %cst_12 = arith.constant dense<0.000000e+00> : vector<8x8xf32>
    %17 = tpu.matmul %14, %15, %cst_12 {dimension_numbers = #tpu.dot_dimension_numbers<[1], [1], [0], [0], [0, 0, 1, 0], [], []>} : vector<8x4xf32>, vector<8x4xf32>, vector<8x8xf32> -> vector<8x8xf32>
    %cst_13 = arith.constant dense<0xFF800000> : vector<8xf32>
    %18 = vector.multi_reduction <maximumf>, %17, %cst_13 [1] : vector<8x8xf32> to vector<8xf32>
    %19 = vector.shape_cast %18 : vector<8xf32> to vector<8x1xf32>
    %20 = vector.broadcast %19 : vector<8x1xf32> to vector<8x8xf32>
    %21 = arith.subf %17, %20 : vector<8x8xf32>
    %22 = math.exp %21 : vector<8x8xf32>
    %cst_14 = arith.constant dense<0.000000e+00> : vector<8xf32>
    %23 = vector.multi_reduction <add>, %22, %cst_14 [1] : vector<8x8xf32> to vector<8xf32>
    %24 = vector.shape_cast %23 : vector<8xf32> to vector<8x1xf32>
    %25 = tpu.reciprocal %24 {approx = true} : vector<8x1xf32> -> vector<8x1xf32>
    %26 = vector.broadcast %25 : vector<8x1xf32> to vector<8x8xf32>
    %27 = arith.mulf %22, %26 : vector<8x8xf32>
    %cst_15 = arith.constant dense<0.000000e+00> : vector<8x4xf32>
    %28 = tpu.matmul %27, %16, %cst_15 {dimension_numbers = #tpu.dot_dimension_numbers<[1], [0], [0], [1], [0, 0, 1, 1], [], []>} : vector<8x8xf32>, vector<8x4xf32>, vector<8x4xf32> -> vector<8x4xf32>
    %29 = vector.extract_strided_slice %5 {offsets = [0, 4], sizes = [8, 4], strides = [1, 1]} : vector<16x32xf32> to vector<8x4xf32>
    %30 = vector.extract_strided_slice %12 {offsets = [0, 4], sizes = [8, 4], strides = [1, 1]} : vector<16x32xf32> to vector<8x4xf32>
    %31 = vector.extract_strided_slice %13 {offsets = [0, 4], sizes = [8, 4], strides = [1, 1]} : vector<16x32xf32> to vector<8x4xf32>
    %cst_16 = arith.constant dense<0.000000e+00> : vector<8x8xf32>
    %32 = tpu.matmul %29, %30, %cst_16 {dimension_numbers = #tpu.dot_dimension_numbers<[1], [1], [0], [0], [0, 0, 1, 0], [], []>} : vector<8x4xf32>, vector<8x4xf32>, vector<8x8xf32> -> vector<8x8xf32>
    %cst_17 = arith.constant dense<0xFF800000> : vector<8xf32>
    %33 = vector.multi_reduction <maximumf>, %32, %cst_17 [1] : vector<8x8xf32> to vector<8xf32>
    %34 = vector.shape_cast %33 : vector<8xf32> to vector<8x1xf32>
    %35 = vector.broadcast %34 : vector<8x1xf32> to vector<8x8xf32>
    %36 = arith.subf %32, %35 : vector<8x8xf32>
    %37 = math.exp %36 : vector<8x8xf32>
    %cst_18 = arith.constant dense<0.000000e+00> : vector<8xf32>
    %38 = vector.multi_reduction <add>, %37, %cst_18 [1] : vector<8x8xf32> to vector<8xf32>
    %39 = vector.shape_cast %38 : vector<8xf32> to vector<8x1xf32>
    %40 = tpu.reciprocal %39 {approx = true} : vector<8x1xf32> -> vector<8x1xf32>
    %41 = vector.broadcast %40 : vector<8x1xf32> to vector<8x8xf32>
    %42 = arith.mulf %37, %41 : vector<8x8xf32>
    %cst_19 = arith.constant dense<0.000000e+00> : vector<8x4xf32>
    %43 = tpu.matmul %42, %31, %cst_19 {dimension_numbers = #tpu.dot_dimension_numbers<[1], [0], [0], [1], [0, 0, 1, 1], [], []>} : vector<8x8xf32>, vector<8x4xf32>, vector<8x4xf32> -> vector<8x4xf32>
    %44 = vector.extract_strided_slice %5 {offsets = [0, 8], sizes = [8, 4], strides = [1, 1]} : vector<16x32xf32> to vector<8x4xf32>
    %45 = vector.extract_strided_slice %12 {offsets = [0, 8], sizes = [8, 4], strides = [1, 1]} : vector<16x32xf32> to vector<8x4xf32>
    %46 = vector.extract_strided_slice %13 {offsets = [0, 8], sizes = [8, 4], strides = [1, 1]} : vector<16x32xf32> to vector<8x4xf32>
    %cst_20 = arith.constant dense<0.000000e+00> : vector<8x8xf32>
    %47 = tpu.matmul %44, %45, %cst_20 {dimension_numbers = #tpu.dot_dimension_numbers<[1], [1], [0], [0], [0, 0, 1, 0], [], []>} : vector<8x4xf32>, vector<8x4xf32>, vector<8x8xf32> -> vector<8x8xf32>
    %cst_21 = arith.constant dense<0xFF800000> : vector<8xf32>
    %48 = vector.multi_reduction <maximumf>, %47, %cst_21 [1] : vector<8x8xf32> to vector<8xf32>
    %49 = vector.shape_cast %48 : vector<8xf32> to vector<8x1xf32>
    %50 = vector.broadcast %49 : vector<8x1xf32> to vector<8x8xf32>
    %51 = arith.subf %47, %50 : vector<8x8xf32>
    %52 = math.exp %51 : vector<8x8xf32>
    %cst_22 = arith.constant dense<0.000000e+00> : vector<8xf32>
    %53 = vector.multi_reduction <add>, %52, %cst_22 [1] : vector<8x8xf32> to vector<8xf32>
    %54 = vector.shape_cast %53 : vector<8xf32> to vector<8x1xf32>
    %55 = tpu.reciprocal %54 {approx = true} : vector<8x1xf32> -> vector<8x1xf32>
    %56 = vector.broadcast %55 : vector<8x1xf32> to vector<8x8xf32>
    %57 = arith.mulf %52, %56 : vector<8x8xf32>
    %cst_23 = arith.constant dense<0.000000e+00> : vector<8x4xf32>
    %58 = tpu.matmul %57, %46, %cst_23 {dimension_numbers = #tpu.dot_dimension_numbers<[1], [0], [0], [1], [0, 0, 1, 1], [], []>} : vector<8x8xf32>, vector<8x4xf32>, vector<8x4xf32> -> vector<8x4xf32>
    %59 = vector.extract_strided_slice %5 {offsets = [0, 12], sizes = [8, 4], strides = [1, 1]} : vector<16x32xf32> to vector<8x4xf32>
    %60 = vector.extract_strided_slice %12 {offsets = [0, 12], sizes = [8, 4], strides = [1, 1]} : vector<16x32xf32> to vector<8x4xf32>
    %61 = vector.extract_strided_slice %13 {offsets = [0, 12], sizes = [8, 4], strides = [1, 1]} : vector<16x32xf32> to vector<8x4xf32>
    %cst_24 = arith.constant dense<0.000000e+00> : vector<8x8xf32>
    %62 = tpu.matmul %59, %60, %cst_24 {dimension_numbers = #tpu.dot_dimension_numbers<[1], [1], [0], [0], [0, 0, 1, 0], [], []>} : vector<8x4xf32>, vector<8x4xf32>, vector<8x8xf32> -> vector<8x8xf32>
    %cst_25 = arith.constant dense<0xFF800000> : vector<8xf32>
    %63 = vector.multi_reduction <maximumf>, %62, %cst_25 [1] : vector<8x8xf32> to vector<8xf32>
    %64 = vector.shape_cast %63 : vector<8xf32> to vector<8x1xf32>
    %65 = vector.broadcast %64 : vector<8x1xf32> to vector<8x8xf32>
    %66 = arith.subf %62, %65 : vector<8x8xf32>
    %67 = math.exp %66 : vector<8x8xf32>
    %cst_26 = arith.constant dense<0.000000e+00> : vector<8xf32>
    %68 = vector.multi_reduction <add>, %67, %cst_26 [1] : vector<8x8xf32> to vector<8xf32>
    %69 = vector.shape_cast %68 : vector<8xf32> to vector<8x1xf32>
    %70 = tpu.reciprocal %69 {approx = true} : vector<8x1xf32> -> vector<8x1xf32>
    %71 = vector.broadcast %70 : vector<8x1xf32> to vector<8x8xf32>
    %72 = arith.mulf %67, %71 : vector<8x8xf32>
    %cst_27 = arith.constant dense<0.000000e+00> : vector<8x4xf32>
    %73 = tpu.matmul %72, %61, %cst_27 {dimension_numbers = #tpu.dot_dimension_numbers<[1], [0], [0], [1], [0, 0, 1, 1], [], []>} : vector<8x8xf32>, vector<8x4xf32>, vector<8x4xf32> -> vector<8x4xf32>
    %74 = vector.extract_strided_slice %5 {offsets = [0, 16], sizes = [8, 4], strides = [1, 1]} : vector<16x32xf32> to vector<8x4xf32>
    %75 = vector.extract_strided_slice %12 {offsets = [0, 16], sizes = [8, 4], strides = [1, 1]} : vector<16x32xf32> to vector<8x4xf32>
    %76 = vector.extract_strided_slice %13 {offsets = [0, 16], sizes = [8, 4], strides = [1, 1]} : vector<16x32xf32> to vector<8x4xf32>
    %cst_28 = arith.constant dense<0.000000e+00> : vector<8x8xf32>
    %77 = tpu.matmul %74, %75, %cst_28 {dimension_numbers = #tpu.dot_dimension_numbers<[1], [1], [0], [0], [0, 0, 1, 0], [], []>} : vector<8x4xf32>, vector<8x4xf32>, vector<8x8xf32> -> vector<8x8xf32>
    %cst_29 = arith.constant dense<0xFF800000> : vector<8xf32>
    %78 = vector.multi_reduction <maximumf>, %77, %cst_29 [1] : vector<8x8xf32> to vector<8xf32>
    %79 = vector.shape_cast %78 : vector<8xf32> to vector<8x1xf32>
    %80 = vector.broadcast %79 : vector<8x1xf32> to vector<8x8xf32>
    %81 = arith.subf %77, %80 : vector<8x8xf32>
    %82 = math.exp %81 : vector<8x8xf32>
    %cst_30 = arith.constant dense<0.000000e+00> : vector<8xf32>
    %83 = vector.multi_reduction <add>, %82, %cst_30 [1] : vector<8x8xf32> to vector<8xf32>
    %84 = vector.shape_cast %83 : vector<8xf32> to vector<8x1xf32>
    %85 = tpu.reciprocal %84 {approx = true} : vector<8x1xf32> -> vector<8x1xf32>
    %86 = vector.broadcast %85 : vector<8x1xf32> to vector<8x8xf32>
    %87 = arith.mulf %82, %86 : vector<8x8xf32>
    %cst_31 = arith.constant dense<0.000000e+00> : vector<8x4xf32>
    %88 = tpu.matmul %87, %76, %cst_31 {dimension_numbers = #tpu.dot_dimension_numbers<[1], [0], [0], [1], [0, 0, 1, 1], [], []>} : vector<8x8xf32>, vector<8x4xf32>, vector<8x4xf32> -> vector<8x4xf32>
    %89 = vector.extract_strided_slice %5 {offsets = [0, 20], sizes = [8, 4], strides = [1, 1]} : vector<16x32xf32> to vector<8x4xf32>
    %90 = vector.extract_strided_slice %12 {offsets = [0, 20], sizes = [8, 4], strides = [1, 1]} : vector<16x32xf32> to vector<8x4xf32>
    %91 = vector.extract_strided_slice %13 {offsets = [0, 20], sizes = [8, 4], strides = [1, 1]} : vector<16x32xf32> to vector<8x4xf32>
    %cst_32 = arith.constant dense<0.000000e+00> : vector<8x8xf32>
    %92 = tpu.matmul %89, %90, %cst_32 {dimension_numbers = #tpu.dot_dimension_numbers<[1], [1], [0], [0], [0, 0, 1, 0], [], []>} : vector<8x4xf32>, vector<8x4xf32>, vector<8x8xf32> -> vector<8x8xf32>
    %cst_33 = arith.constant dense<0xFF800000> : vector<8xf32>
    %93 = vector.multi_reduction <maximumf>, %92, %cst_33 [1] : vector<8x8xf32> to vector<8xf32>
    %94 = vector.shape_cast %93 : vector<8xf32> to vector<8x1xf32>
    %95 = vector.broadcast %94 : vector<8x1xf32> to vector<8x8xf32>
    %96 = arith.subf %92, %95 : vector<8x8xf32>
    %97 = math.exp %96 : vector<8x8xf32>
    %cst_34 = arith.constant dense<0.000000e+00> : vector<8xf32>
    %98 = vector.multi_reduction <add>, %97, %cst_34 [1] : vector<8x8xf32> to vector<8xf32>
    %99 = vector.shape_cast %98 : vector<8xf32> to vector<8x1xf32>
    %100 = tpu.reciprocal %99 {approx = true} : vector<8x1xf32> -> vector<8x1xf32>
    %101 = vector.broadcast %100 : vector<8x1xf32> to vector<8x8xf32>
    %102 = arith.mulf %97, %101 : vector<8x8xf32>
    %cst_35 = arith.constant dense<0.000000e+00> : vector<8x4xf32>
    %103 = tpu.matmul %102, %91, %cst_35 {dimension_numbers = #tpu.dot_dimension_numbers<[1], [0], [0], [1], [0, 0, 1, 1], [], []>} : vector<8x8xf32>, vector<8x4xf32>, vector<8x4xf32> -> vector<8x4xf32>
    %104 = vector.extract_strided_slice %5 {offsets = [0, 24], sizes = [8, 4], strides = [1, 1]} : vector<16x32xf32> to vector<8x4xf32>
    %105 = vector.extract_strided_slice %12 {offsets = [0, 24], sizes = [8, 4], strides = [1, 1]} : vector<16x32xf32> to vector<8x4xf32>
    %106 = vector.extract_strided_slice %13 {offsets = [0, 24], sizes = [8, 4], strides = [1, 1]} : vector<16x32xf32> to vector<8x4xf32>
    %cst_36 = arith.constant dense<0.000000e+00> : vector<8x8xf32>
    %107 = tpu.matmul %104, %105, %cst_36 {dimension_numbers = #tpu.dot_dimension_numbers<[1], [1], [0], [0], [0, 0, 1, 0], [], []>} : vector<8x4xf32>, vector<8x4xf32>, vector<8x8xf32> -> vector<8x8xf32>
    %cst_37 = arith.constant dense<0xFF800000> : vector<8xf32>
    %108 = vector.multi_reduction <maximumf>, %107, %cst_37 [1] : vector<8x8xf32> to vector<8xf32>
    %109 = vector.shape_cast %108 : vector<8xf32> to vector<8x1xf32>
    %110 = vector.broadcast %109 : vector<8x1xf32> to vector<8x8xf32>
    %111 = arith.subf %107, %110 : vector<8x8xf32>
    %112 = math.exp %111 : vector<8x8xf32>
    %cst_38 = arith.constant dense<0.000000e+00> : vector<8xf32>
    %113 = vector.multi_reduction <add>, %112, %cst_38 [1] : vector<8x8xf32> to vector<8xf32>
    %114 = vector.shape_cast %113 : vector<8xf32> to vector<8x1xf32>
    %115 = tpu.reciprocal %114 {approx = true} : vector<8x1xf32> -> vector<8x1xf32>
    %116 = vector.broadcast %115 : vector<8x1xf32> to vector<8x8xf32>
    %117 = arith.mulf %112, %116 : vector<8x8xf32>
    %cst_39 = arith.constant dense<0.000000e+00> : vector<8x4xf32>
    %118 = tpu.matmul %117, %106, %cst_39 {dimension_numbers = #tpu.dot_dimension_numbers<[1], [0], [0], [1], [0, 0, 1, 1], [], []>} : vector<8x8xf32>, vector<8x4xf32>, vector<8x4xf32> -> vector<8x4xf32>
    %119 = vector.extract_strided_slice %5 {offsets = [0, 28], sizes = [8, 4], strides = [1, 1]} : vector<16x32xf32> to vector<8x4xf32>
    %120 = vector.extract_strided_slice %12 {offsets = [0, 28], sizes = [8, 4], strides = [1, 1]} : vector<16x32xf32> to vector<8x4xf32>
    %121 = vector.extract_strided_slice %13 {offsets = [0, 28], sizes = [8, 4], strides = [1, 1]} : vector<16x32xf32> to vector<8x4xf32>
    %cst_40 = arith.constant dense<0.000000e+00> : vector<8x8xf32>
    %122 = tpu.matmul %119, %120, %cst_40 {dimension_numbers = #tpu.dot_dimension_numbers<[1], [1], [0], [0], [0, 0, 1, 0], [], []>} : vector<8x4xf32>, vector<8x4xf32>, vector<8x8xf32> -> vector<8x8xf32>
    %cst_41 = arith.constant dense<0xFF800000> : vector<8xf32>
    %123 = vector.multi_reduction <maximumf>, %122, %cst_41 [1] : vector<8x8xf32> to vector<8xf32>
    %124 = vector.shape_cast %123 : vector<8xf32> to vector<8x1xf32>
    %125 = vector.broadcast %124 : vector<8x1xf32> to vector<8x8xf32>
    %126 = arith.subf %122, %125 : vector<8x8xf32>
    %127 = math.exp %126 : vector<8x8xf32>
    %cst_42 = arith.constant dense<0.000000e+00> : vector<8xf32>
    %128 = vector.multi_reduction <add>, %127, %cst_42 [1] : vector<8x8xf32> to vector<8xf32>
    %129 = vector.shape_cast %128 : vector<8xf32> to vector<8x1xf32>
    %130 = tpu.reciprocal %129 {approx = true} : vector<8x1xf32> -> vector<8x1xf32>
    %131 = vector.broadcast %130 : vector<8x1xf32> to vector<8x8xf32>
    %132 = arith.mulf %127, %131 : vector<8x8xf32>
    %cst_43 = arith.constant dense<0.000000e+00> : vector<8x4xf32>
    %133 = tpu.matmul %132, %121, %cst_43 {dimension_numbers = #tpu.dot_dimension_numbers<[1], [0], [0], [1], [0, 0, 1, 1], [], []>} : vector<8x8xf32>, vector<8x4xf32>, vector<8x4xf32> -> vector<8x4xf32>
    %134 = tpu.concatenate %28, %43, %58, %73, %88, %103, %118, %133 in 1 : vector<8x4xf32>, vector<8x4xf32>, vector<8x4xf32>, vector<8x4xf32>, vector<8x4xf32>, vector<8x4xf32>, vector<8x4xf32>, vector<8x4xf32> -> vector<8x32xf32>
    %135 = vector.extract_strided_slice %5 {offsets = [8, 0], sizes = [8, 4], strides = [1, 1]} : vector<16x32xf32> to vector<8x4xf32>
    %136 = vector.extract_strided_slice %12 {offsets = [8, 0], sizes = [8, 4], strides = [1, 1]} : vector<16x32xf32> to vector<8x4xf32>
    %137 = vector.extract_strided_slice %13 {offsets = [8, 0], sizes = [8, 4], strides = [1, 1]} : vector<16x32xf32> to vector<8x4xf32>
    %cst_44 = arith.constant dense<0.000000e+00> : vector<8x8xf32>
    %138 = tpu.matmul %135, %136, %cst_44 {dimension_numbers = #tpu.dot_dimension_numbers<[1], [1], [0], [0], [0, 0, 1, 0], [], []>} : vector<8x4xf32>, vector<8x4xf32>, vector<8x8xf32> -> vector<8x8xf32>
    %cst_45 = arith.constant dense<0xFF800000> : vector<8xf32>
    %139 = vector.multi_reduction <maximumf>, %138, %cst_45 [1] : vector<8x8xf32> to vector<8xf32>
    %140 = vector.shape_cast %139 : vector<8xf32> to vector<8x1xf32>
    %141 = vector.broadcast %140 : vector<8x1xf32> to vector<8x8xf32>
    %142 = arith.subf %138, %141 : vector<8x8xf32>
    %143 = math.exp %142 : vector<8x8xf32>
    %cst_46 = arith.constant dense<0.000000e+00> : vector<8xf32>
    %144 = vector.multi_reduction <add>, %143, %cst_46 [1] : vector<8x8xf32> to vector<8xf32>
    %145 = vector.shape_cast %144 : vector<8xf32> to vector<8x1xf32>
    %146 = tpu.reciprocal %145 {approx = true} : vector<8x1xf32> -> vector<8x1xf32>
    %147 = vector.broadcast %146 : vector<8x1xf32> to vector<8x8xf32>
    %148 = arith.mulf %143, %147 : vector<8x8xf32>
    %cst_47 = arith.constant dense<0.000000e+00> : vector<8x4xf32>
    %149 = tpu.matmul %148, %137, %cst_47 {dimension_numbers = #tpu.dot_dimension_numbers<[1], [0], [0], [1], [0, 0, 1, 1], [], []>} : vector<8x8xf32>, vector<8x4xf32>, vector<8x4xf32> -> vector<8x4xf32>
    %150 = vector.extract_strided_slice %5 {offsets = [8, 4], sizes = [8, 4], strides = [1, 1]} : vector<16x32xf32> to vector<8x4xf32>
    %151 = vector.extract_strided_slice %12 {offsets = [8, 4], sizes = [8, 4], strides = [1, 1]} : vector<16x32xf32> to vector<8x4xf32>
    %152 = vector.extract_strided_slice %13 {offsets = [8, 4], sizes = [8, 4], strides = [1, 1]} : vector<16x32xf32> to vector<8x4xf32>
    %cst_48 = arith.constant dense<0.000000e+00> : vector<8x8xf32>
    %153 = tpu.matmul %150, %151, %cst_48 {dimension_numbers = #tpu.dot_dimension_numbers<[1], [1], [0], [0], [0, 0, 1, 0], [], []>} : vector<8x4xf32>, vector<8x4xf32>, vector<8x8xf32> -> vector<8x8xf32>
    %cst_49 = arith.constant dense<0xFF800000> : vector<8xf32>
    %154 = vector.multi_reduction <maximumf>, %153, %cst_49 [1] : vector<8x8xf32> to vector<8xf32>
    %155 = vector.shape_cast %154 : vector<8xf32> to vector<8x1xf32>
    %156 = vector.broadcast %155 : vector<8x1xf32> to vector<8x8xf32>
    %157 = arith.subf %153, %156 : vector<8x8xf32>
    %158 = math.exp %157 : vector<8x8xf32>
    %cst_50 = arith.constant dense<0.000000e+00> : vector<8xf32>
    %159 = vector.multi_reduction <add>, %158, %cst_50 [1] : vector<8x8xf32> to vector<8xf32>
    %160 = vector.shape_cast %159 : vector<8xf32> to vector<8x1xf32>
    %161 = tpu.reciprocal %160 {approx = true} : vector<8x1xf32> -> vector<8x1xf32>
    %162 = vector.broadcast %161 : vector<8x1xf32> to vector<8x8xf32>
    %163 = arith.mulf %158, %162 : vector<8x8xf32>
    %cst_51 = arith.constant dense<0.000000e+00> : vector<8x4xf32>
    %164 = tpu.matmul %163, %152, %cst_51 {dimension_numbers = #tpu.dot_dimension_numbers<[1], [0], [0], [1], [0, 0, 1, 1], [], []>} : vector<8x8xf32>, vector<8x4xf32>, vector<8x4xf32> -> vector<8x4xf32>
    %165 = vector.extract_strided_slice %5 {offsets = [8, 8], sizes = [8, 4], strides = [1, 1]} : vector<16x32xf32> to vector<8x4xf32>
    %166 = vector.extract_strided_slice %12 {offsets = [8, 8], sizes = [8, 4], strides = [1, 1]} : vector<16x32xf32> to vector<8x4xf32>
    %167 = vector.extract_strided_slice %13 {offsets = [8, 8], sizes = [8, 4], strides = [1, 1]} : vector<16x32xf32> to vector<8x4xf32>
    %cst_52 = arith.constant dense<0.000000e+00> : vector<8x8xf32>
    %168 = tpu.matmul %165, %166, %cst_52 {dimension_numbers = #tpu.dot_dimension_numbers<[1], [1], [0], [0], [0, 0, 1, 0], [], []>} : vector<8x4xf32>, vector<8x4xf32>, vector<8x8xf32> -> vector<8x8xf32>
    %cst_53 = arith.constant dense<0xFF800000> : vector<8xf32>
    %169 = vector.multi_reduction <maximumf>, %168, %cst_53 [1] : vector<8x8xf32> to vector<8xf32>
    %170 = vector.shape_cast %169 : vector<8xf32> to vector<8x1xf32>
    %171 = vector.broadcast %170 : vector<8x1xf32> to vector<8x8xf32>
    %172 = arith.subf %168, %171 : vector<8x8xf32>
    %173 = math.exp %172 : vector<8x8xf32>
    %cst_54 = arith.constant dense<0.000000e+00> : vector<8xf32>
    %174 = vector.multi_reduction <add>, %173, %cst_54 [1] : vector<8x8xf32> to vector<8xf32>
    %175 = vector.shape_cast %174 : vector<8xf32> to vector<8x1xf32>
    %176 = tpu.reciprocal %175 {approx = true} : vector<8x1xf32> -> vector<8x1xf32>
    %177 = vector.broadcast %176 : vector<8x1xf32> to vector<8x8xf32>
    %178 = arith.mulf %173, %177 : vector<8x8xf32>
    %cst_55 = arith.constant dense<0.000000e+00> : vector<8x4xf32>
    %179 = tpu.matmul %178, %167, %cst_55 {dimension_numbers = #tpu.dot_dimension_numbers<[1], [0], [0], [1], [0, 0, 1, 1], [], []>} : vector<8x8xf32>, vector<8x4xf32>, vector<8x4xf32> -> vector<8x4xf32>
    %180 = vector.extract_strided_slice %5 {offsets = [8, 12], sizes = [8, 4], strides = [1, 1]} : vector<16x32xf32> to vector<8x4xf32>
    %181 = vector.extract_strided_slice %12 {offsets = [8, 12], sizes = [8, 4], strides = [1, 1]} : vector<16x32xf32> to vector<8x4xf32>
    %182 = vector.extract_strided_slice %13 {offsets = [8, 12], sizes = [8, 4], strides = [1, 1]} : vector<16x32xf32> to vector<8x4xf32>
    %cst_56 = arith.constant dense<0.000000e+00> : vector<8x8xf32>
    %183 = tpu.matmul %180, %181, %cst_56 {dimension_numbers = #tpu.dot_dimension_numbers<[1], [1], [0], [0], [0, 0, 1, 0], [], []>} : vector<8x4xf32>, vector<8x4xf32>, vector<8x8xf32> -> vector<8x8xf32>
    %cst_57 = arith.constant dense<0xFF800000> : vector<8xf32>
    %184 = vector.multi_reduction <maximumf>, %183, %cst_57 [1] : vector<8x8xf32> to vector<8xf32>
    %185 = vector.shape_cast %184 : vector<8xf32> to vector<8x1xf32>
    %186 = vector.broadcast %185 : vector<8x1xf32> to vector<8x8xf32>
    %187 = arith.subf %183, %186 : vector<8x8xf32>
    %188 = math.exp %187 : vector<8x8xf32>
    %cst_58 = arith.constant dense<0.000000e+00> : vector<8xf32>
    %189 = vector.multi_reduction <add>, %188, %cst_58 [1] : vector<8x8xf32> to vector<8xf32>
    %190 = vector.shape_cast %189 : vector<8xf32> to vector<8x1xf32>
    %191 = tpu.reciprocal %190 {approx = true} : vector<8x1xf32> -> vector<8x1xf32>
    %192 = vector.broadcast %191 : vector<8x1xf32> to vector<8x8xf32>
    %193 = arith.mulf %188, %192 : vector<8x8xf32>
    %cst_59 = arith.constant dense<0.000000e+00> : vector<8x4xf32>
    %194 = tpu.matmul %193, %182, %cst_59 {dimension_numbers = #tpu.dot_dimension_numbers<[1], [0], [0], [1], [0, 0, 1, 1], [], []>} : vector<8x8xf32>, vector<8x4xf32>, vector<8x4xf32> -> vector<8x4xf32>
    %195 = vector.extract_strided_slice %5 {offsets = [8, 16], sizes = [8, 4], strides = [1, 1]} : vector<16x32xf32> to vector<8x4xf32>
    %196 = vector.extract_strided_slice %12 {offsets = [8, 16], sizes = [8, 4], strides = [1, 1]} : vector<16x32xf32> to vector<8x4xf32>
    %197 = vector.extract_strided_slice %13 {offsets = [8, 16], sizes = [8, 4], strides = [1, 1]} : vector<16x32xf32> to vector<8x4xf32>
    %cst_60 = arith.constant dense<0.000000e+00> : vector<8x8xf32>
    %198 = tpu.matmul %195, %196, %cst_60 {dimension_numbers = #tpu.dot_dimension_numbers<[1], [1], [0], [0], [0, 0, 1, 0], [], []>} : vector<8x4xf32>, vector<8x4xf32>, vector<8x8xf32> -> vector<8x8xf32>
    %cst_61 = arith.constant dense<0xFF800000> : vector<8xf32>
    %199 = vector.multi_reduction <maximumf>, %198, %cst_61 [1] : vector<8x8xf32> to vector<8xf32>
    %200 = vector.shape_cast %199 : vector<8xf32> to vector<8x1xf32>
    %201 = vector.broadcast %200 : vector<8x1xf32> to vector<8x8xf32>
    %202 = arith.subf %198, %201 : vector<8x8xf32>
    %203 = math.exp %202 : vector<8x8xf32>
    %cst_62 = arith.constant dense<0.000000e+00> : vector<8xf32>
    %204 = vector.multi_reduction <add>, %203, %cst_62 [1] : vector<8x8xf32> to vector<8xf32>
    %205 = vector.shape_cast %204 : vector<8xf32> to vector<8x1xf32>
    %206 = tpu.reciprocal %205 {approx = true} : vector<8x1xf32> -> vector<8x1xf32>
    %207 = vector.broadcast %206 : vector<8x1xf32> to vector<8x8xf32>
    %208 = arith.mulf %203, %207 : vector<8x8xf32>
    %cst_63 = arith.constant dense<0.000000e+00> : vector<8x4xf32>
    %209 = tpu.matmul %208, %197, %cst_63 {dimension_numbers = #tpu.dot_dimension_numbers<[1], [0], [0], [1], [0, 0, 1, 1], [], []>} : vector<8x8xf32>, vector<8x4xf32>, vector<8x4xf32> -> vector<8x4xf32>
    %210 = vector.extract_strided_slice %5 {offsets = [8, 20], sizes = [8, 4], strides = [1, 1]} : vector<16x32xf32> to vector<8x4xf32>
    %211 = vector.extract_strided_slice %12 {offsets = [8, 20], sizes = [8, 4], strides = [1, 1]} : vector<16x32xf32> to vector<8x4xf32>
    %212 = vector.extract_strided_slice %13 {offsets = [8, 20], sizes = [8, 4], strides = [1, 1]} : vector<16x32xf32> to vector<8x4xf32>
    %cst_64 = arith.constant dense<0.000000e+00> : vector<8x8xf32>
    %213 = tpu.matmul %210, %211, %cst_64 {dimension_numbers = #tpu.dot_dimension_numbers<[1], [1], [0], [0], [0, 0, 1, 0], [], []>} : vector<8x4xf32>, vector<8x4xf32>, vector<8x8xf32> -> vector<8x8xf32>
    %cst_65 = arith.constant dense<0xFF800000> : vector<8xf32>
    %214 = vector.multi_reduction <maximumf>, %213, %cst_65 [1] : vector<8x8xf32> to vector<8xf32>
    %215 = vector.shape_cast %214 : vector<8xf32> to vector<8x1xf32>
    %216 = vector.broadcast %215 : vector<8x1xf32> to vector<8x8xf32>
    %217 = arith.subf %213, %216 : vector<8x8xf32>
    %218 = math.exp %217 : vector<8x8xf32>
    %cst_66 = arith.constant dense<0.000000e+00> : vector<8xf32>
    %219 = vector.multi_reduction <add>, %218, %cst_66 [1] : vector<8x8xf32> to vector<8xf32>
    %220 = vector.shape_cast %219 : vector<8xf32> to vector<8x1xf32>
    %221 = tpu.reciprocal %220 {approx = true} : vector<8x1xf32> -> vector<8x1xf32>
    %222 = vector.broadcast %221 : vector<8x1xf32> to vector<8x8xf32>
    %223 = arith.mulf %218, %222 : vector<8x8xf32>
    %cst_67 = arith.constant dense<0.000000e+00> : vector<8x4xf32>
    %224 = tpu.matmul %223, %212, %cst_67 {dimension_numbers = #tpu.dot_dimension_numbers<[1], [0], [0], [1], [0, 0, 1, 1], [], []>} : vector<8x8xf32>, vector<8x4xf32>, vector<8x4xf32> -> vector<8x4xf32>
    %225 = vector.extract_strided_slice %5 {offsets = [8, 24], sizes = [8, 4], strides = [1, 1]} : vector<16x32xf32> to vector<8x4xf32>
    %226 = vector.extract_strided_slice %12 {offsets = [8, 24], sizes = [8, 4], strides = [1, 1]} : vector<16x32xf32> to vector<8x4xf32>
    %227 = vector.extract_strided_slice %13 {offsets = [8, 24], sizes = [8, 4], strides = [1, 1]} : vector<16x32xf32> to vector<8x4xf32>
    %cst_68 = arith.constant dense<0.000000e+00> : vector<8x8xf32>
    %228 = tpu.matmul %225, %226, %cst_68 {dimension_numbers = #tpu.dot_dimension_numbers<[1], [1], [0], [0], [0, 0, 1, 0], [], []>} : vector<8x4xf32>, vector<8x4xf32>, vector<8x8xf32> -> vector<8x8xf32>
    %cst_69 = arith.constant dense<0xFF800000> : vector<8xf32>
    %229 = vector.multi_reduction <maximumf>, %228, %cst_69 [1] : vector<8x8xf32> to vector<8xf32>
    %230 = vector.shape_cast %229 : vector<8xf32> to vector<8x1xf32>
    %231 = vector.broadcast %230 : vector<8x1xf32> to vector<8x8xf32>
    %232 = arith.subf %228, %231 : vector<8x8xf32>
    %233 = math.exp %232 : vector<8x8xf32>
    %cst_70 = arith.constant dense<0.000000e+00> : vector<8xf32>
    %234 = vector.multi_reduction <add>, %233, %cst_70 [1] : vector<8x8xf32> to vector<8xf32>
    %235 = vector.shape_cast %234 : vector<8xf32> to vector<8x1xf32>
    %236 = tpu.reciprocal %235 {approx = true} : vector<8x1xf32> -> vector<8x1xf32>
    %237 = vector.broadcast %236 : vector<8x1xf32> to vector<8x8xf32>
    %238 = arith.mulf %233, %237 : vector<8x8xf32>
    %cst_71 = arith.constant dense<0.000000e+00> : vector<8x4xf32>
    %239 = tpu.matmul %238, %227, %cst_71 {dimension_numbers = #tpu.dot_dimension_numbers<[1], [0], [0], [1], [0, 0, 1, 1], [], []>} : vector<8x8xf32>, vector<8x4xf32>, vector<8x4xf32> -> vector<8x4xf32>
    %240 = vector.extract_strided_slice %5 {offsets = [8, 28], sizes = [8, 4], strides = [1, 1]} : vector<16x32xf32> to vector<8x4xf32>
    %241 = vector.extract_strided_slice %12 {offsets = [8, 28], sizes = [8, 4], strides = [1, 1]} : vector<16x32xf32> to vector<8x4xf32>
    %242 = vector.extract_strided_slice %13 {offsets = [8, 28], sizes = [8, 4], strides = [1, 1]} : vector<16x32xf32> to vector<8x4xf32>
    %cst_72 = arith.constant dense<0.000000e+00> : vector<8x8xf32>
    %243 = tpu.matmul %240, %241, %cst_72 {dimension_numbers = #tpu.dot_dimension_numbers<[1], [1], [0], [0], [0, 0, 1, 0], [], []>} : vector<8x4xf32>, vector<8x4xf32>, vector<8x8xf32> -> vector<8x8xf32>
    %cst_73 = arith.constant dense<0xFF800000> : vector<8xf32>
    %244 = vector.multi_reduction <maximumf>, %243, %cst_73 [1] : vector<8x8xf32> to vector<8xf32>
    %245 = vector.shape_cast %244 : vector<8xf32> to vector<8x1xf32>
    %246 = vector.broadcast %245 : vector<8x1xf32> to vector<8x8xf32>
    %247 = arith.subf %243, %246 : vector<8x8xf32>
    %248 = math.exp %247 : vector<8x8xf32>
    %cst_74 = arith.constant dense<0.000000e+00> : vector<8xf32>
    %249 = vector.multi_reduction <add>, %248, %cst_74 [1] : vector<8x8xf32> to vector<8xf32>
    %250 = vector.shape_cast %249 : vector<8xf32> to vector<8x1xf32>
    %251 = tpu.reciprocal %250 {approx = true} : vector<8x1xf32> -> vector<8x1xf32>
    %252 = vector.broadcast %251 : vector<8x1xf32> to vector<8x8xf32>
    %253 = arith.mulf %248, %252 : vector<8x8xf32>
    %cst_75 = arith.constant dense<0.000000e+00> : vector<8x4xf32>
    %254 = tpu.matmul %253, %242, %cst_75 {dimension_numbers = #tpu.dot_dimension_numbers<[1], [0], [0], [1], [0, 0, 1, 1], [], []>} : vector<8x8xf32>, vector<8x4xf32>, vector<8x4xf32> -> vector<8x4xf32>
    %255 = tpu.concatenate %149, %164, %179, %194, %209, %224, %239, %254 in 1 : vector<8x4xf32>, vector<8x4xf32>, vector<8x4xf32>, vector<8x4xf32>, vector<8x4xf32>, vector<8x4xf32>, vector<8x4xf32>, vector<8x4xf32> -> vector<8x32xf32>
    %256 = tpu.concatenate %134, %255 in 0 : vector<8x32xf32>, vector<8x32xf32> -> vector<16x32xf32>
    %c0_76 = arith.constant 0 : index
    %c0_77 = arith.constant 0 : index
    %257 = vector.load %arg7[%c0_76, %c0_77] : memref<32x32xf32, #tpu.memory_space<vmem>>, vector<32x32xf32>
    %cst_78 = arith.constant dense<0.000000e+00> : vector<16x32xf32>
    %258 = tpu.matmul %256, %257, %cst_78 {dimension_numbers = #tpu.dot_dimension_numbers<[1], [0], [0], [1], [0, 0, 1, 1], [], []>} : vector<16x32xf32>, vector<32x32xf32>, vector<16x32xf32> -> vector<16x32xf32>
    %c0_79 = arith.constant 0 : index
    %c0_80 = arith.constant 0 : index
    %259 = vector.load %arg8[%c0_79, %c0_80] : memref<1x32xf32, #tpu.memory_space<vmem>>, vector<1x32xf32>
    %260 = vector.broadcast %259 : vector<1x32xf32> to vector<16x32xf32>
    %261 = arith.addf %258, %260 : vector<16x32xf32>
    %c0_81 = arith.constant 0 : index
    %c0_82 = arith.constant 0 : index
    %262 = vector.load %arg9[%c0_81, %c0_82] : memref<16x32xf32, #tpu.memory_space<vmem>>, vector<16x32xf32>
    tpu.vector_store %arg9[%c0_81, %c0_82], %261 {strides = array<i32>} : memref<16x32xf32, #tpu.memory_space<vmem>>, vector<16x32xf32>,
    return
  }
  func.func @transform_0(%arg0: i32) -> (i32, i32) {
    %c0_i32 = arith.constant 0 : i32
    %c0_i32_0 = arith.constant 0 : i32
    return %arg0, %c0_i32 : i32, i32
  }
  func.func @transform_1(%arg0: i32) -> (i32, i32) {
    %c0_i32 = arith.constant 0 : i32
    %c0_i32_0 = arith.constant 0 : i32
    return %arg0, %c0_i32 : i32, i32
  }
  func.func @transform_2(%arg0: i32) -> (i32, i32) {
    %c0_i32 = arith.constant 0 : i32
    %c0_i32_0 = arith.constant 0 : i32
    %c0_i32_1 = arith.constant 0 : i32
    return %c0_i32, %c0_i32_0 : i32, i32
  }
  func.func @transform_3(%arg0: i32) -> (i32, i32) {
    %c0_i32 = arith.constant 0 : i32
    %c0_i32_0 = arith.constant 0 : i32
    %c0_i32_1 = arith.constant 0 : i32
    return %c0_i32, %c0_i32_0 : i32, i32
  }
  func.func @transform_4(%arg0: i32) -> (i32, i32) {
    %c0_i32 = arith.constant 0 : i32
    %c0_i32_0 = arith.constant 0 : i32
    %c0_i32_1 = arith.constant 0 : i32
    return %c0_i32, %c0_i32_0 : i32, i32
  }
  func.func @transform_5(%arg0: i32) -> (i32, i32) {
    %c0_i32 = arith.constant 0 : i32
    %c0_i32_0 = arith.constant 0 : i32
    %c0_i32_1 = arith.constant 0 : i32
    return %c0_i32, %c0_i32_0 : i32, i32
  }
  func.func @transform_6(%arg0: i32) -> (i32, i32) {
    %c0_i32 = arith.constant 0 : i32
    %c0_i32_0 = arith.constant 0 : i32
    %c0_i32_1 = arith.constant 0 : i32
    return %c0_i32, %c0_i32_0 : i32, i32
  }
  func.func @transform_7(%arg0: i32) -> (i32, i32) {
    %c0_i32 = arith.constant 0 : i32
    %c0_i32_0 = arith.constant 0 : i32
    %c0_i32_1 = arith.constant 0 : i32
    return %c0_i32, %c0_i32_0 : i32, i32
  }
  func.func @transform_8(%arg0: i32) -> (i32, i32) {
    %c0_i32 = arith.constant 0 : i32
    %c0_i32_0 = arith.constant 0 : i32
    return %arg0, %c0_i32 : i32, i32
  }
}

</mosaic_0001>

<bundles_post_ra>
// kernel: tpu_custom_call.1
= control target key start
LH: loop header
LB: loop body
LE: loop exit
PB: predicated region body
PF: predicated region fallthrough
CT: control target
= control target key end

     0   :  { %13 = vsyncpa [#allocation3], 0  ;;  %s4207_s0 = inlined_call_operand.hbm [shape: f32[16,16], index: 0, kind: input, shape index: {}]   ;;  %s4208_s1 = inlined_call_operand.hbm [shape: f32[16,32], index: 1, kind: input, shape index: {}]   ;;  %s4209_s2 = inlined_call_operand.hbm [shape: f32[16,32], index: 2, kind: input, shape index: {}]   ;;  %s4210_s3 = inlined_call_operand.vmem [shape: f32[1,32], index: 3, kind: input, shape index: {}]   ;;  %s4211_s4 = inlined_call_operand.hbm [shape: f32[32,64], index: 4, kind: input, shape index: {}]   ;;  %s4212_s5 = inlined_call_operand.vmem [shape: f32[1,64], index: 5, kind: input, shape index: {}]   ;;  %s4213_s6 = inlined_call_operand.hbm [shape: f32[32,32], index: 6, kind: input, shape index: {}]   ;;  %s4214_s7 = inlined_call_operand.vmem [shape: f32[1,32], index: 7, kind: input, shape index: {}]   ;;  %s4215_s8 = inlined_call_operand.hbm [shape: f32[16,32], index: 8, kind: output, shape index: {}]  }
   0x1   :  { %14 = vsyncpa [#allocation6], 0 }
   0x2   :  { %15 = vsyncpa [#allocation9], 0 }
   0x3   :  { %16 = vsyncpa [#allocation4], 0  ;;  %s3660_s27 = smov [#allocation5]   ;;  %s3661_s29 = smov [#allocation8]  }
   0x4   :  { %s34_s28 = sshll.u32 %s3660_s27, 4  ;;  %s60_s30 = sshll.u32 %s3661_s29, 4  ;;  %s35_s28 = int_to_ptr.vmem [resolvable:$true] %s34_s28  ;;  %s61_s30 = int_to_ptr.vmem [resolvable:$true] %s60_s30 }
   0x5   :  { %s3540_s9 = scalar_lea.vmem %s35_s28, 256  ;;  %p3545_p1 = scmp.lt.s32.totalorder %s35_s28, %s35_s28 }
   0x6   :  { %p3541_p0 = scmp.ne.s32.totalorder %s35_s28, %s3540_s9  ;;  %p3546_p2 = scmp.lt.s32.totalorder %s3540_s9, %s3540_s9 }
   0x8   :  { %p3547_p3 = por %p3546_p2, %p3545_p1 }
   0xa   :  { %p3548_p4 = pnand %p3547_p3, %p3541_p0 }
   0xc   :  { %3551 = shalt.err (!%p3548_p4)
}
   0xd   :  { %s3662_s10 = smov 128   ;;  %s3663_s11 = smov 8  }
   0xe   :  { %40 = dma.hbm_to_vmem [thread:$0]  %s4208_s1, 256, %s35_s28, [#allocation6], %s3662_s10, %s3662_s10, %s3663_s11  }
   0xf   :  { %s3560_s14 = scalar_lea.vmem %s61_s30, 512  ;;  %p3565_p6 = scmp.lt.s32.totalorder %s61_s30, %s61_s30 }
  0x10   :  { %p3561_p5 = scmp.ne.s32.totalorder %s61_s30, %s3560_s14  ;;  %p3566_p7 = scmp.lt.s32.totalorder %s3560_s14, %s3560_s14 }
  0x12   :  { %p3567_p8 = por %p3566_p7, %p3565_p6 }
  0x14   :  { %p3568_p9 = pnand %p3567_p8, %p3561_p5 }
  0x16   :  { %3571 = shalt.err (!%p3568_p9)
}
  0x17   :  { %66 = dma.hbm_to_vmem [thread:$0]  %s4211_s4, 512, %s61_s30, [#allocation9], %s3662_s10, %s3662_s10, %s3663_s11  }
  0x18   :  { %s3664_s17 = smov [#allocation2]   ;;  %s3665_s19 = smov [#allocation7]  }
  0x19   :  { %s22_s18 = sshll.u32 %s3664_s17, 4  ;;  %s46_s20 = sshll.u32 %s3665_s19, 4  ;;  %s23_s18 = int_to_ptr.vmem [resolvable:$true] %s22_s18  ;;  %s47_s20 = int_to_ptr.vmem [resolvable:$true] %s46_s20 }
  0x1a   :  { %s3580_s1 = scalar_lea.vmem %s23_s18, 256  ;;  %p3585_p11 = scmp.lt.s32.totalorder %s23_s18, %s23_s18 }
  0x1b   :  { %p3581_p10 = scmp.ne.s32.totalorder %s23_s18, %s3580_s1  ;;  %p3586_p12 = scmp.lt.s32.totalorder %s3580_s1, %s3580_s1 }
  0x1d   :  { %p3587_p13 = por %p3586_p12, %p3585_p11 }
  0x1f   :  { %p3588_p0 = pnand %p3587_p13, %p3581_p10 }
  0x21   :  { %3591 = shalt.err (!%p3588_p0)
}
  0x22   :  { %28 = dma.hbm_to_vmem [thread:$0]  %s4207_s0, 256, %s23_s18, [#allocation3], %s3662_s10, %s3662_s10, %s3663_s11  }
  0x23   :  { %s3600_s4 = scalar_lea.vmem %s47_s20, 256  ;;  %p3605_p2 = scmp.lt.s32.totalorder %s47_s20, %s47_s20 }
  0x24   :  { %p3601_p1 = scmp.ne.s32.totalorder %s47_s20, %s3600_s4  ;;  %p3606_p3 = scmp.lt.s32.totalorder %s3600_s4, %s3600_s4 }
  0x26   :  { %p3607_p4 = por %p3606_p3, %p3605_p2 }
  0x28   :  { %p3608_p5 = pnand %p3607_p4, %p3601_p1 }
  0x2a   :  { %3611 = shalt.err (!%p3608_p5)
}
  0x2b   :  { %52 = dma.hbm_to_vmem [thread:$0]  %s4209_s2, 256, %s47_s20, [#allocation6], %s3662_s10, %s3662_s10, %s3663_s11  }
  0x2c   :  { %s3666_s25 = smov [#allocation10]  }
  0x2d   :  { %s74_s26 = sshll.u32 %s3666_s25, 4  ;;  %s75_s26 = int_to_ptr.vmem [resolvable:$true] %s74_s26 }
  0x2e   :  { %s3620_s27 = scalar_lea.vmem %s75_s26, 512  ;;  %p3625_p7 = scmp.lt.s32.totalorder %s75_s26, %s75_s26 }
  0x2f   :  { %p3621_p6 = scmp.ne.s32.totalorder %s75_s26, %s3620_s27  ;;  %p3626_p8 = scmp.lt.s32.totalorder %s3620_s27, %s3620_s27 }
  0x31   :  { %p3627_p9 = por %p3626_p8, %p3625_p7 }
  0x33   :  { %p3628_p10 = pnand %p3627_p9, %p3621_p6 }
  0x35   :  { %3631 = shalt.err (!%p3628_p10)
}
  0x36   :  { %80 = dma.hbm_to_vmem [thread:$0]  %s4213_s6, 512, %s75_s26, [#allocation9], %s3662_s10, %s3662_s10, %s3663_s11  }
  0x37   :  { %3652 = dma.done.wait [#allocation3], 256  }
  0x38   :  { %3653 = vsyncadd [#allocation3], 4294967040 }
  0x39   :  { %3654 = dma.done.wait [#allocation6], 512  }
  0x3a   :  { %3655 = vsyncadd [#allocation6], 4294966784 }
  0x3b   :  { %3656 = dma.done.wait [#allocation9], 1024  }
  0x3c   :  { %3657 = vsyncadd [#allocation9], 4294966272  ;;  %v196_v0 = vld [vmem:[#allocation8 + $0x18] sm:$0xff]  ;;  %v195_v1 = vld [vmem:[#allocation8 + $0x10] sm:$0xff]  ;;  %vm204_vm0 = vcmask 261120   ;;  %vm109_vm1 = vcmask 130048  }
  0x3d   :  { %3255 = vmatprep.subr.mxu1 %v196_v0  ;;  %v101_v2 = vld [vmem:[#allocation7 + $0x8] sm:$0xff]  ;;  %v191_v3 = vld [vmem:[#allocation5] sm:$0xff]  ;;  %v194_v4 = vld [vmem:[#allocation8 + $0x8] sm:$0xff]  ;;  %v3667_v10 = vmov 0.0   ;;  %vm3668_vm2 = vmmov 0   ;;  %vm286_vm3 = vcmask 31744  }
  0x3e   :  { %3256 = vmatpush3.msra.mxu1 %v196_v0  ;;  %3248 = vmatprep.subr.mxu0 %v101_v2  ;;  %v100_v5 = vld [vmem:[#allocation7] sm:$0xff]  ;;  %v193_v6 = vld [vmem:[#allocation8] sm:$0xff]  ;;  %v99_v8 = vld [vmem:[#allocation2 + $0x8] sm:$0xff]  ;;  %s3669_s9 = smov 120   ;;  %s3670_s12 = smov 124   ;;  %vm363_vm4 = vcmask 64512  }
  0x3f   :  { %3257 = vmatprep.subr.mxu1 %v195_v1  ;;  %3249 = vmatpush3.msra.mxu0 %v101_v2  ;;  %v98_v7 = vld [vmem:[#allocation2] sm:$0xff]  ;;  %v192_v9 = vld [vmem:[#allocation5 + $0x8] sm:$0xff]  ;;  %s3673_s13 = smov 108   ;;  %s3674_s14 = smov 104   ;;  %vm1636_vm5 = vcmask 97280   ;;  %vm1639_vm6 = vcmask 162816  }
  0x40   :  { %3258 = vmatpush3.msra.mxu1 %v195_v1  ;;  %3263 = vmatprep.mubr.msk.f32.mxu1 %vm204_vm0, %v191_v3  ;;  %v3114_v13 = vld [vmem:[%s4212_s5] ss:$0 sm:$0xff]  ;;  %s3672_s5 = smov 112   ;;  %s3675_s15 = smov 100   ;;  %vm1641_vm7 = vcmask 195584   ;;  %vm1643_vm8 = vcmask 228352  }
  0x41   :  { %3259 = vmatprep.subr.mxu1 %v194_v4  ;;  %3250 = vmatprep.subr.mxu0 %v100_v5  ;;  %v3111_v14 = vld [vmem:[%s4210_s3] ss:$0 sm:$0xff]  ;;  %s3671_s3 = smov 116   ;;  %s3676_s16 = smov 92  }
  0x42   :  { %3260 = vmatpush3.msra.mxu1 %v194_v4  ;;  %3251 = vmatpush3.msra.mxu0 %v100_v5  ;;  %s3677_s17 = smov 96   ;;  %s3678_s18 = smov 88  }
  0x43   :  { %3261 = vmatprep.subr.mxu1 %v193_v6  ;;  %3252 = vmatprep.mubr.msk.f32.mxu0 %vm109_vm1, %v98_v7  ;;  %s3679_s19 = smov 84   ;;  %s3680_s20 = smov 80  }
  0x44   :  { %3262 = vmatpush3.msra.mxu1 %v193_v6  ;;  %3253 = vmatmul.mubr.msk.f32.vlgmr.msra.gmra.mxu0 %vm109_vm1, %v99_v8  ;;  %s3681_s1 = smov 72   ;;  %s3682_s21 = smov 76  }
  0x45   :  { %3264 = vmatmul.mubr.msk.f32.vlgmr.msra.gmra.mxu1 %vm204_vm0, %v192_v9  ;;  %3266 = vmatprep.subr.mxu0 %v3667_v10  ;;  %s3683_s22 = smov 68   ;;  %s3684_s4 = smov 4  }
  0x46   :  { %3276 = vmatprep.subr.mxu1 %v3667_v10  ;;  %3268 = vmatprep.mubr.msk.f32.mxu0 %vm3668_vm2, %v3667_v10  ;;  %s3685_s23 = smov 12   ;;  %s3686_s24 = smov 16  }
  0x47   :  { %3278 = vmatprep.mubr.msk.f32.mxu1 %vm3668_vm2, %v3667_v10  ;;  %s3687_s25 = smov 20   ;;  %s3688_s26 = smov 24  }
  0x48   :  { %s3689_s27 = smov 28   ;;  %s3690_s2 = smov [#allocation11]  }
  0x49   :  { %s3097_s6 = sshll.u32 %s3690_s2, 4  ;;  %s3098_s6 = int_to_ptr.vmem [resolvable:$true] %s3097_s6 }
  0x4a   :  { %s3632_s29 = scalar_lea.vmem %s3098_s6, 256  ;;  %p3637_p12 = scmp.lt.s32.totalorder %s3098_s6, %s3098_s6 }
  0x4b   :  { %p3633_p11 = scmp.ne.s32.totalorder %s3098_s6, %s3632_s29  ;;  %p3638_p13 = scmp.lt.s32.totalorder %s3632_s29, %s3632_s29 }
  0x4d   :  { %p3639_p0 = por %p3638_p13, %p3637_p12 }
  0x4f   :  { %p3640_p1 = pnand %p3639_p0, %p3633_p11 }
 0x104   :  { %v3254_v11 = vpop.f32.mrf.mxu0 }
 0x105   :  { %v3265_v12 = vpop.f32.mrf.mxu1  ;;  %v3797_v19 = vadd.f32 %v3254_v11, %v3111_v14 }
 0x106   :  { %v182_v16 = vpop.f32.mrf.mxu0  ;;  %v3799_v20 = vadd.f32 %v3265_v12, %v3114_v13 }
 0x107   :  { %v277_v15 = vpop.f32.mrf.mxu1  ;;  %v183_v18 = vadd.f32 %v3111_v14, %v182_v16 }
 0x108   :  { %v3782_v17 = vadd.f32 %v3114_v13, %v277_v15 }
 0x10a   :  { %618 = vrot.lane.b32.xlu1 %v3782_v17, %s3669_s9  ;;  %453 = vrot.lane.b32.xlu0 %v3782_v17, %s3670_s12 }
 0x10b   :  { %3267 = vmatpush3.xpose.msk.msra.mxu0 %vm286_vm3, %v3782_v17 }
 0x10c   :  { %3271 = vmatprep.subr.mxu0 %v3667_v10 }
 0x10e   :  { %3269 = vmatmul.mubr.msk.f32.vlgmr.msra.gmra.mxu0 %vm286_vm3, %v183_v18  ;;  %616 = vrot.lane.b32.xlu1 %v183_v18, %s3669_s9 }
 0x10f   :  { %451 = vrot.lane.b32.xlu0 %v183_v18, %s3670_s12  ;;  %3273 = vmatprep.mubr.msk.f32.mxu0 %vm3668_vm2, %v3667_v10 }
 0x112   :  { %781 = vrot.lane.b32.xlu1 %v183_v18, %s3671_s3 }
 0x113   :  { %783 = vrot.lane.b32.xlu0 %v3782_v17, %s3671_s3 }
 0x116   :  { %946 = vrot.lane.b32.xlu1 %v183_v18, %s3672_s5 }
 0x117   :  { %948 = vrot.lane.b32.xlu0 %v3782_v17, %s3672_s5 }
 0x11a   :  { %1111 = vrot.lane.b32.xlu1 %v183_v18, %s3673_s13 }
 0x11b   :  { %1113 = vrot.lane.b32.xlu0 %v3782_v17, %s3673_s13 }
 0x11e   :  { %1276 = vrot.lane.b32.xlu1 %v183_v18, %s3674_s14 }
 0x11f   :  { %1278 = vrot.lane.b32.xlu0 %v3782_v17, %s3674_s14 }
 0x122   :  { %1441 = vrot.lane.b32.xlu1 %v183_v18, %s3675_s15 }
 0x123   :  { %1443 = vrot.lane.b32.xlu0 %v3782_v17, %s3675_s15 }
 0x126   :  { %1808 = vrot.lane.b32.xlu1 %v3797_v19, %s3670_s12 }
 0x127   :  { %1810 = vrot.lane.b32.xlu0 %v3799_v20, %s3670_s12 }
 0x12a   :  { %1973 = vrot.lane.b32.xlu1 %v3797_v19, %s3669_s9 }
 0x12b   :  { %1975 = vrot.lane.b32.xlu0 %v3799_v20, %s3669_s9 }
 0x12e   :  { %2138 = vrot.lane.b32.xlu1 %v3797_v19, %s3671_s3 }
 0x12f   :  { %2140 = vrot.lane.b32.xlu0 %v3799_v20, %s3671_s3 }
 0x132   :  { %2303 = vrot.lane.b32.xlu1 %v3797_v19, %s3672_s5 }
 0x133   :  { %2305 = vrot.lane.b32.xlu0 %v3799_v20, %s3672_s5 }
 0x136   :  { %2468 = vrot.lane.b32.xlu1 %v3797_v19, %s3673_s13 }
 0x137   :  { %2470 = vrot.lane.b32.xlu0 %v3799_v20, %s3673_s13 }
 0x13a   :  { %2633 = vrot.lane.b32.xlu1 %v3797_v19, %s3674_s14 }
 0x13b   :  { %2635 = vrot.lane.b32.xlu0 %v3799_v20, %s3674_s14 }
 0x13e   :  { %2798 = vrot.lane.b32.xlu1 %v3797_v19, %s3675_s15 }
 0x13f   :  { %2800 = vrot.lane.b32.xlu0 %v3799_v20, %s3675_s15 }
 0x142   :  { %540 = vrot.lane.b32.xlu1 %v3782_v17, %s3676_s16 }
 0x143   :  { %375 = vrot.lane.b32.xlu0 %v3782_v17, %s3677_s17 }
 0x146   :  { %705 = vrot.lane.b32.xlu1 %v3782_v17, %s3678_s18 }
 0x147   :  { %870 = vrot.lane.b32.xlu0 %v3782_v17, %s3679_s19 }
 0x14a   :  { %1035 = vrot.lane.b32.xlu1 %v3782_v17, %s3680_s20 }
 0x14b   :  { %1365 = vrot.lane.b32.xlu0 %v3782_v17, %s3681_s1 }
 0x14e   :  { %1200 = vrot.lane.b32.xlu1 %v3782_v17, %s3682_s21 }
 0x17c   :  { %v619_v21 = vpop.permute.xlu1 %618  ;;  %v454_v22 = vpop.permute.xlu0 %453 }
 0x17d   :  { %3277 = vmatpush3.xpose.msk.msra.mxu1 %vm286_vm3, %v454_v22 }
 0x17e   :  { %3286 = vmatprep.subr.mxu1 %v3667_v10 }
 0x180   :  { %v617_v23 = vpop.permute.xlu1 %616 }
 0x181   :  { %v452_v24 = vpop.permute.xlu0 %451 }
 0x182   :  { %3279 = vmatmul.mubr.msk.f32.vlgmr.msra.gmra.mxu1 %vm286_vm3, %v452_v24 }
 0x183   :  { %3287 = vmatpush3.xpose.msk.msra.mxu1 %vm286_vm3, %v619_v21  ;;  %3288 = vmatprep.mubr.msk.f32.mxu1 %vm3668_vm2, %v3667_v10 }
 0x184   :  { %v782_v25 = vpop.permute.xlu1 %781  ;;  %3296 = vmatprep.subr.mxu1 %v3667_v10 }
 0x185   :  { %v784_v26 = vpop.permute.xlu0 %783 }
 0x186   :  { %3289 = vmatmul.mubr.msk.f32.vlgmr.msra.gmra.mxu1 %vm286_vm3, %v617_v23 }
 0x187   :  { %3297 = vmatpush3.xpose.msk.msra.mxu1 %vm286_vm3, %v784_v26  ;;  %3298 = vmatprep.mubr.msk.f32.mxu1 %vm3668_vm2, %v3667_v10 }
 0x188   :  { %v947_v27 = vpop.permute.xlu1 %946  ;;  %3306 = vmatprep.subr.mxu1 %v3667_v10 }
 0x189   :  { %v949_v28 = vpop.permute.xlu0 %948 }
 0x18a   :  { %3299 = vmatmul.mubr.msk.f32.vlgmr.msra.gmra.mxu1 %vm286_vm3, %v782_v25 }
 0x18b   :  { %3307 = vmatpush3.xpose.msk.msra.mxu1 %vm286_vm3, %v949_v28  ;;  %3308 = vmatprep.mubr.msk.f32.mxu1 %vm3668_vm2, %v3667_v10 }
 0x18c   :  { %v1112_v29 = vpop.permute.xlu1 %1111  ;;  %3316 = vmatprep.subr.mxu1 %v3667_v10 }
 0x18d   :  { %v1114_v30 = vpop.permute.xlu0 %1113 }
 0x18e   :  { %3309 = vmatmul.mubr.msk.f32.vlgmr.msra.gmra.mxu1 %vm286_vm3, %v947_v27 }
 0x18f   :  { %3317 = vmatpush3.xpose.msk.msra.mxu1 %vm286_vm3, %v1114_v30  ;;  %3318 = vmatprep.mubr.msk.f32.mxu1 %vm3668_vm2, %v3667_v10 }
 0x190   :  { %v1277_v31 = vpop.permute.xlu1 %1276  ;;  %3326 = vmatprep.subr.mxu1 %v3667_v10 }
 0x191   :  { %v1279_v32 = vpop.permute.xlu0 %1278 }
 0x192   :  { %3319 = vmatmul.mubr.msk.f32.vlgmr.msra.gmra.mxu1 %vm286_vm3, %v1112_v29 }
 0x193   :  { %3327 = vmatpush3.xpose.msk.msra.mxu1 %vm286_vm3, %v1279_v32  ;;  %3328 = vmatprep.mubr.msk.f32.mxu1 %vm3668_vm2, %v3667_v10 }
 0x194   :  { %v1442_v33 = vpop.permute.xlu1 %1441  ;;  %3336 = vmatprep.subr.mxu1 %v3667_v10 }
 0x195   :  { %v1444_v34 = vpop.permute.xlu0 %1443 }
 0x196   :  { %3329 = vmatmul.mubr.msk.f32.vlgmr.msra.gmra.mxu1 %vm286_vm3, %v1277_v31 }
 0x197   :  { %3337 = vmatpush3.xpose.msk.msra.mxu1 %vm286_vm3, %v1444_v34  ;;  %3338 = vmatprep.mubr.msk.f32.mxu1 %vm3668_vm2, %v3667_v10 }
 0x198   :  { %v1809_v35 = vpop.permute.xlu1 %1808  ;;  %3346 = vmatprep.subr.mxu1 %v3667_v10 }
 0x199   :  { %v1811_v36 = vpop.permute.xlu0 %1810 }
 0x19a   :  { %3339 = vmatmul.mubr.msk.f32.vlgmr.msra.gmra.mxu1 %vm286_vm3, %v1442_v33 }
 0x19b   :  { %3347 = vmatpush3.xpose.msk.msra.mxu1 %vm286_vm3, %v3799_v20  ;;  %3348 = vmatprep.mubr.msk.f32.mxu1 %vm3668_vm2, %v3667_v10 }
 0x19c   :  { %v1974_v37 = vpop.permute.xlu1 %1973  ;;  %3356 = vmatprep.subr.mxu1 %v3667_v10 }
 0x19d   :  { %v1976_v38 = vpop.permute.xlu0 %1975 }
 0x19e   :  { %3349 = vmatmul.mubr.msk.f32.vlgmr.msra.gmra.mxu1 %vm286_vm3, %v3797_v19 }
 0x19f   :  { %3357 = vmatpush3.xpose.msk.msra.mxu1 %vm286_vm3, %v1811_v36  ;;  %3358 = vmatprep.mubr.msk.f32.mxu1 %vm3668_vm2, %v3667_v10 }
 0x1a0   :  { %3366 = vmatprep.subr.mxu1 %v3667_v10  ;;  %v2139_v39 = vpop.permute.xlu1 %2138 }
 0x1a1   :  { %v2141_v40 = vpop.permute.xlu0 %2140 }
 0x1a2   :  { %3359 = vmatmul.mubr.msk.f32.vlgmr.msra.gmra.mxu1 %vm286_vm3, %v1809_v35 }
 0x1a3   :  { %3367 = vmatpush3.xpose.msk.msra.mxu1 %vm286_vm3, %v1976_v38  ;;  %3368 = vmatprep.mubr.msk.f32.mxu1 %vm3668_vm2, %v3667_v10 }
 0x1a4   :  { %3376 = vmatprep.subr.mxu1 %v3667_v10  ;;  %v2304_v42 = vpop.permute.xlu1 %2303 }
 0x1a5   :  { %v2306_v41 = vpop.permute.xlu0 %2305 }
 0x1a6   :  { %3369 = vmatmul.mubr.msk.f32.vlgmr.msra.gmra.mxu1 %vm286_vm3, %v1974_v37 }
 0x1a7   :  { %3377 = vmatpush3.xpose.msk.msra.mxu1 %vm286_vm3, %v2141_v40  ;;  %3378 = vmatprep.mubr.msk.f32.mxu1 %vm3668_vm2, %v3667_v10 }
 0x1a8   :  { %3386 = vmatprep.subr.mxu1 %v3667_v10  ;;  %v2469_v44 = vpop.permute.xlu1 %2468 }
 0x1a9   :  { %v2471_v43 = vpop.permute.xlu0 %2470 }
 0x1aa   :  { %3379 = vmatmul.mubr.msk.f32.vlgmr.msra.gmra.mxu1 %vm286_vm3, %v2139_v39 }
 0x1ab   :  { %3387 = vmatpush3.xpose.msk.msra.mxu1 %vm286_vm3, %v2306_v41  ;;  %3388 = vmatprep.mubr.msk.f32.mxu1 %vm3668_vm2, %v3667_v10 }
 0x1ac   :  { %3396 = vmatprep.subr.mxu1 %v3667_v10  ;;  %v2634_v47 = vpop.permute.xlu1 %2633 }
 0x1ad   :  { %v2636_v45 = vpop.permute.xlu0 %2635 }
 0x1ae   :  { %3389 = vmatmul.mubr.msk.f32.vlgmr.msra.gmra.mxu1 %vm286_vm3, %v2304_v42 }
 0x1af   :  { %3397 = vmatpush3.xpose.msk.msra.mxu1 %vm286_vm3, %v2471_v43  ;;  %3398 = vmatprep.mubr.msk.f32.mxu1 %vm3668_vm2, %v3667_v10 }
 0x1b0   :  { %3406 = vmatprep.subr.mxu1 %v3667_v10  ;;  %v2799_v49 = vpop.permute.xlu1 %2798 }
 0x1b1   :  { %v2801_v46 = vpop.permute.xlu0 %2800 }
 0x1b2   :  { %3399 = vmatmul.mubr.msk.f32.vlgmr.msra.gmra.mxu1 %vm286_vm3, %v2469_v44 }
 0x1b3   :  { %3407 = vmatpush3.xpose.msk.msra.mxu1 %vm286_vm3, %v2636_v45  ;;  %3408 = vmatprep.mubr.msk.f32.mxu1 %vm3668_vm2, %v3667_v10 }
 0x1b4   :  { %3416 = vmatprep.subr.mxu1 %v3667_v10  ;;  %v3979_v43 = vpop.permute.xlu1 %540 }
 0x1b5   :  { %v376_v48 = vpop.permute.xlu0 %375 }
 0x1b6   :  { %3272 = vmatpush3.msra.mxu0 %v376_v48  ;;  %3409 = vmatmul.mubr.msk.f32.vlgmr.msra.gmra.mxu1 %vm286_vm3, %v2634_v47 }
 0x1b7   :  { %3417 = vmatpush3.xpose.msk.msra.mxu1 %vm286_vm3, %v2801_v46  ;;  %3418 = vmatprep.mubr.msk.f32.mxu1 %vm3668_vm2, %v3667_v10 }
 0x1b8   :  { %3281 = vmatprep.subr.mxu0 %v3667_v10  ;;  %v3981_v44 = vpop.permute.xlu1 %705 }
 0x1b9   :  { %v3935_v12 = vpop.permute.xlu0 %870 }
 0x1ba   :  { %3419 = vmatmul.mubr.msk.f32.vlgmr.msra.gmra.mxu1 %vm286_vm3, %v2799_v49 }
 0x1bc   :  { %v3983_v45 = vpop.permute.xlu1 %1035 }
 0x1c0   :  { %v3985_v46 = vpop.permute.xlu1 %1200 }
 0x1ce   :  { %v359_v50 = vpop.f32.mrf.mxu0 }
 0x1cf   :  { %v364_v51 = vsel %vm363_vm4, %v359_v50, -inf }
 0x1d0   :  { %365 = vmax.xlane.f32.xlu0 %v364_v51  ;;  %v3270_v52 = vpop.f32.mrf.mxu0 }
 0x242   :  { %v3905_v53 = vpop.f32.mrf.mxu1 }
 0x243   :  { %v529_v54 = vsel %vm363_vm4, %v3905_v53, -inf }
 0x244   :  { %530 = vmax.xlane.f32.xlu1 %v529_v54  ;;  %v3280_v55 = vpop.f32.mrf.mxu1 }
 0x246   :  { %v3909_v56 = vpop.f32.mrf.mxu1 }
 0x247   :  { %v694_v57 = vsel %vm363_vm4, %v3909_v56, -inf }
 0x248   :  { %v3290_v58 = vpop.f32.mrf.mxu1  ;;  %695 = vmax.xlane.f32.xlu0 %v694_v57 }
 0x24a   :  { %v3913_v59 = vpop.f32.mrf.mxu1 }
 0x24b   :  { %v859_v60 = vsel %vm363_vm4, %v3913_v59, -inf }
 0x24c   :  { %v3300_v61 = vpop.f32.mrf.mxu1  ;;  %860 = vmax.xlane.f32.xlu0 %v859_v60 }
 0x24e   :  { %v3917_v62 = vpop.f32.mrf.mxu1 }
 0x24f   :  { %v1024_v32 = vsel %vm363_vm4, %v3917_v62, -inf }
 0x250   :  { %v3310_v63 = vpop.f32.mrf.mxu1 }
 0x252   :  { %v3919_v0 = vpop.f32.mrf.mxu1 }
 0x253   :  { %v1189_v1 = vsel %vm363_vm4, %v3919_v0, -inf }
 0x254   :  { %v3320_v2 = vpop.f32.mrf.mxu1  ;;  %1190 = vmax.xlane.f32.xlu0 %v1189_v1 }
 0x255   :  { %1530 = vrot.lane.b32.xlu1 %v3782_v17, %s3683_s22  ;;  %v3941_v17 = vpop.permute.xlu0 %1365 }
 0x256   :  { %v3925_v3 = vpop.f32.mrf.mxu1 }
 0x257   :  { %v1354_v35 = vsel %vm363_vm4, %v3925_v3, -inf }
 0x258   :  { %v3330_v4 = vpop.f32.mrf.mxu1 }
 0x259   :  { %v366_v22 = vpop.xlane.xlu0 %365 }
 0x25a   :  { %v3927_v5 = vpop.f32.mrf.mxu1  ;;  %v367_v24 = vsub.f32 %v359_v50, %v366_v22 }
 0x25b   :  { %v1519_v6 = vsel %vm363_vm4, %v3927_v5, -inf }
 0x25c   :  { %v3340_v7 = vpop.f32.mrf.mxu1  ;;  %1520 = vmax.xlane.f32.xlu0 %v1519_v6  ;;  %v368_v28 = vmul.f32 1.442695, %v367_v24 }
 0x25e   :  { %v3931_v8 = vpop.f32.mrf.mxu1  ;;  %3468 = vpow2.f32 %v368_v28 }
 0x25f   :  { %v1721_v36 = vsel %vm363_vm4, %v3931_v8, -inf }
 0x260   :  { %v3350_v9 = vpop.f32.mrf.mxu1 }
 0x262   :  { %v3933_v11 = vpop.f32.mrf.mxu1 }
 0x263   :  { %v1886_v13 = vsel %vm363_vm4, %v3933_v11, -inf }
 0x264   :  { %v3360_v14 = vpop.f32.mrf.mxu1  ;;  %1887 = vmax.xlane.f32.xlu0 %v1886_v13 }
 0x266   :  { %v3939_v15 = vpop.f32.mrf.mxu1 }
 0x267   :  { %v2051_v37 = vsel %vm363_vm4, %v3939_v15, -inf }
 0x268   :  { %v3370_v16 = vpop.f32.mrf.mxu1 }
 0x26a   :  { %v3943_v18 = vpop.f32.mrf.mxu1 }
 0x26b   :  { %v2216_v19 = vsel %vm363_vm4, %v3943_v18, -inf  ;;  %v3965_v38 = vpop.eup %3468 }
 0x26c   :  { %v3380_v21 = vpop.f32.mrf.mxu1  ;;  %2217 = vmax.xlane.f32.xlu0 %v2216_v19  ;;  %v370_v39 = vsel %vm363_vm4, %v3965_v38, 0.0 }
 0x26e   :  { %v3947_v23 = vpop.f32.mrf.mxu1 }
 0x26f   :  { %v2381_v40 = vsel %vm363_vm4, %v3947_v23, -inf }
 0x270   :  { %v3390_v25 = vpop.f32.mrf.mxu1 }
 0x272   :  { %v3949_v26 = vpop.f32.mrf.mxu1 }
 0x273   :  { %v2546_v27 = vsel %vm363_vm4, %v3949_v26, -inf }
 0x274   :  { %v3400_v29 = vpop.f32.mrf.mxu1  ;;  %2547 = vmax.xlane.f32.xlu0 %v2546_v27 }
 0x276   :  { %v3953_v30 = vpop.f32.mrf.mxu1 }
 0x277   :  { %v2711_v41 = vsel %vm363_vm4, %v3953_v30, -inf }
 0x278   :  { %v3410_v31 = vpop.f32.mrf.mxu1 }
 0x279   :  { %1025 = vmax.xlane.f32.xlu1 %v1024_v32 }
 0x27a   :  { %v3957_v33 = vpop.f32.mrf.mxu1 }
 0x27b   :  { %v2876_v42 = vsel %vm363_vm4, %v3957_v33, -inf }
 0x27c   :  { %v3420_v34 = vpop.f32.mrf.mxu1 }
 0x27d   :  { %1355 = vmax.xlane.f32.xlu1 %v1354_v35 }
 0x281   :  { %1722 = vmax.xlane.f32.xlu1 %v1721_v36 }
 0x285   :  { %2052 = vmax.xlane.f32.xlu1 %v2051_v37 }
 0x289   :  { %371 = vadd.xlane.f32.xlu1 %v370_v39 }
 0x28a   :  { %1897 = vrot.lane.b32.xlu0 %v3799_v20, %s3676_s16 }
 0x28d   :  { %2382 = vmax.xlane.f32.xlu1 %v2381_v40 }
 0x291   :  { %2712 = vmax.xlane.f32.xlu1 %v2711_v41 }
 0x2a2   :  { %1732 = vrot.lane.b32.xlu1 %v3799_v20, %s3677_s17 }
 0x2a9   :  { %2877 = vmax.xlane.f32.xlu0 %v2876_v42 }
 0x2cd   :  { %v531_v47 = vpop.xlane.xlu1 %530 }
 0x2ce   :  { %v532_v48 = vsub.f32 %v3905_v53, %v531_v47 }
 0x2d0   :  { %v533_v49 = vmul.f32 1.442695, %v532_v48 }
 0x2d1   :  { %v696_v50 = vpop.xlane.xlu0 %695  ;;  %v4007_v6 = vpop.permute.xlu1 %1530 }
 0x2d2   :  { %3470 = vpow2.f32 %v533_v49  ;;  %v697_v51 = vsub.f32 %v3909_v56, %v696_v50 }
 0x2d4   :  { %v698_v52 = vmul.f32 1.442695, %v697_v51 }
 0x2d5   :  { %v861_v54 = vpop.xlane.xlu0 %860 }
 0x2d6   :  { %3472 = vpow2.f32 %v698_v52  ;;  %v862_v55 = vsub.f32 %v3913_v59, %v861_v54 }
 0x2d8   :  { %v863_v57 = vmul.f32 1.442695, %v862_v55 }
 0x2da   :  { %3474 = vpow2.f32 %v863_v57 }
 0x2dd   :  { %v1191_v58 = vpop.xlane.xlu0 %1190 }
 0x2de   :  { %v1192_v60 = vsub.f32 %v3919_v0, %v1191_v58 }
 0x2df   :  { %v3991_v61 = vpop.eup %3470 }
 0x2e0   :  { %v1193_v63 = vmul.f32 1.442695, %v1192_v60  ;;  %v535_v53 = vsel %vm363_vm4, %v3991_v61, 0.0 }
 0x2e1   :  { %536 = vadd.xlane.f32.xlu0 %v535_v53 }
 0x2e2   :  { %3476 = vpow2.f32 %v1193_v63 }
 0x2e3   :  { %v3995_v1 = vpop.eup %3472 }
 0x2e4   :  { %v700_v56 = vsel %vm363_vm4, %v3995_v1, 0.0 }
 0x2e5   :  { %701 = vadd.xlane.f32.xlu1 %v700_v56  ;;  %v1521_v7 = vpop.xlane.xlu0 %1520 }
 0x2e6   :  { %v1522_v14 = vsub.f32 %v3927_v5, %v1521_v7 }
 0x2e7   :  { %v3999_v59 = vpop.eup %3474 }
 0x2e8   :  { %v865_v2 = vsel %vm363_vm4, %v3999_v59, 0.0  ;;  %v1523_v24 = vmul.f32 1.442695, %v1522_v14 }
 0x2e9   :  { %866 = vadd.xlane.f32.xlu0 %v865_v2 }
 0x2ed   :  { %v1888_v19 = vpop.xlane.xlu0 %1887 }
 0x2ee   :  { %v1889_v25 = vsub.f32 %v3933_v11, %v1888_v19 }
 0x2ef   :  { %v4003_v0 = vpop.eup %3476 }
 0x2f0   :  { %v1195_v4 = vsel %vm363_vm4, %v4003_v0, 0.0  ;;  %v1890_v31 = vmul.f32 1.442695, %v1889_v25 }
 0x2f1   :  { %1196 = vadd.xlane.f32.xlu0 %v1195_v4 }
 0x302   :  { %v1026_v9 = vpop.xlane.xlu1 %1025 }
 0x303   :  { %v1027_v13 = vsub.f32 %v3917_v62, %v1026_v9  ;;  %v2218_v62 = vpop.xlane.xlu0 %2217 }
 0x304   :  { %v2219_v4 = vsub.f32 %v3943_v18, %v2218_v62 }
 0x305   :  { %v1028_v16 = vmul.f32 1.442695, %v1027_v13 }
 0x306   :  { %v1356_v21 = vpop.xlane.xlu1 %1355  ;;  %v2220_v9 = vmul.f32 1.442695, %v2219_v4 }
 0x307   :  { %3478 = vpow2.f32 %v1028_v16  ;;  %v1357_v22 = vsub.f32 %v3925_v3, %v1356_v21  ;;  %v2548_v36 = vpop.xlane.xlu0 %2547 }
 0x308   :  { %v2549_v11 = vsub.f32 %v3949_v26, %v2548_v36 }
 0x309   :  { %v1358_v27 = vmul.f32 1.442695, %v1357_v22 }
 0x30a   :  { %v1723_v28 = vpop.xlane.xlu1 %1722 }
 0x30b   :  { %3480 = vpow2.f32 %v1358_v27  ;;  %v1724_v29 = vsub.f32 %v3931_v8, %v1723_v28 }
 0x30c   :  { %3482 = vpow2.f32 %v1523_v24 }
 0x30d   :  { %v1725_v32 = vmul.f32 1.442695, %v1724_v29 }
 0x30e   :  { %v2053_v34 = vpop.xlane.xlu1 %2052 }
 0x30f   :  { %3484 = vpow2.f32 %v1725_v32  ;;  %v2054_v5 = vsub.f32 %v3939_v15, %v2053_v34  ;;  %v2550_v15 = vmul.f32 1.442695, %v2549_v11 }
 0x310   :  { %3486 = vpow2.f32 %v1890_v31 }
 0x311   :  { %v2055_v35 = vmul.f32 1.442695, %v2054_v5 }
 0x312   :  { %v372_v3 = vpop.xlane.xlu1 %371 }
 0x313   :  { %3488 = vrcp.f32 %v372_v3 }
 0x314   :  { %v4015_v37 = vpop.eup %3478  ;;  %3490 = vpow2.f32 %v2055_v35 }
 0x315   :  { %v1030_v8 = vsel %vm363_vm4, %v4015_v37, 0.0 }
 0x316   :  { %v2383_v39 = vpop.xlane.xlu1 %2382  ;;  %1031 = vadd.xlane.f32.xlu1 %v1030_v8 }
 0x317   :  { %v2384_v40 = vsub.f32 %v3947_v23, %v2383_v39 }
 0x318   :  { %v4021_v41 = vpop.eup %3480 }
 0x319   :  { %v2385_v42 = vmul.f32 1.442695, %v2384_v40  ;;  %v1360_v47 = vsel %vm363_vm4, %v4021_v41, 0.0  ;;  %v4025_v48 = vpop.eup %3482 }
 0x31a   :  { %1361 = vadd.xlane.f32.xlu1 %v1360_v47  ;;  %v1525_v23 = vsel %vm363_vm4, %v4025_v48, 0.0  ;;  %v2713_v7 = vpop.xlane.xlu1 %2712 }
 0x31b   :  { %3492 = vpow2.f32 %v2385_v42  ;;  %v2714_v13 = vsub.f32 %v3953_v30, %v2713_v7 }
 0x31c   :  { %v4027_v26 = vpop.eup %3484  ;;  %3494 = vpow2.f32 %v2550_v15 }
 0x31d   :  { %v1727_v49 = vsel %vm363_vm4, %v4027_v26, 0.0  ;;  %v4033_v50 = vpop.eup %3486  ;;  %v2715_v14 = vmul.f32 1.442695, %v2714_v13 }
 0x31e   :  { %1728 = vadd.xlane.f32.xlu0 %v1727_v49  ;;  %1526 = vadd.xlane.f32.xlu1 %v1525_v23  ;;  %v1892_v52 = vsel %vm363_vm4, %v4033_v50, 0.0  ;;  %v4076_v30 = vpop.permute.xlu1 %1732 }
 0x320   :  { %v3489_v51 = vpop.eup %3488 }
 0x321   :  { %v4037_v54 = vpop.eup %3490  ;;  %v374_v55 = vmul.f32 %v3489_v51, %v3965_v38 }
 0x322   :  { %1893 = vadd.xlane.f32.xlu1 %v1892_v52  ;;  %v2057_v57 = vsel %vm363_vm4, %v4037_v54, 0.0 }
 0x323   :  { %3274 = vmatmul.mubr.msk.f32.vlgmr.msra.gmra.mxu0 %vm363_vm4, %v374_v55 }
 0x324   :  { %3282 = vmatpush3.msra.mxu0 %v3979_v43  ;;  %3283 = vmatprep.mubr.msk.f32.mxu0 %vm3668_vm2, %v3667_v10  ;;  %v4055_v43 = vpop.permute.xlu0 %1897 }
 0x325   :  { %3291 = vmatprep.subr.mxu0 %v3667_v10 }
 0x326   :  { %2058 = vadd.xlane.f32.xlu1 %v2057_v57 }
 0x328   :  { %v4047_v58 = vpop.eup %3492 }
 0x329   :  { %v2387_v60 = vsel %vm363_vm4, %v4047_v58, 0.0  ;;  %v4051_v63 = vpop.eup %3494 }
 0x32a   :  { %2388 = vadd.xlane.f32.xlu1 %v2387_v60  ;;  %v2552_v38 = vsel %vm363_vm4, %v4051_v63, 0.0 }
 0x32e   :  { %2553 = vadd.xlane.f32.xlu1 %v2552_v38 }
 0x332   :  { %v2878_v53 = vpop.xlane.xlu0 %2877 }
 0x333   :  { %v2879_v56 = vsub.f32 %v3957_v33, %v2878_v53 }
 0x334   :  { %2062 = vrot.lane.b32.xlu0 %v3799_v20, %s3678_s18 }
 0x335   :  { %v2880_v2 = vmul.f32 1.442695, %v2879_v56 }
 0x337   :  { %3496 = vpow2.f32 %v2880_v2 }
 0x338   :  { %3498 = vpow2.f32 %v2220_v9 }
 0x339   :  { %3500 = vpow2.f32 %v2715_v14 }
 0x344   :  { %v4062_v16 = vpop.eup %3496 }
 0x345   :  { %v2882_v19 = vsel %vm363_vm4, %v4062_v16, 0.0  ;;  %v4066_v33 = vpop.eup %3498 }
 0x346   :  { %2883 = vadd.xlane.f32.xlu1 %v2882_v19  ;;  %v2222_v21 = vsel %vm363_vm4, %v4066_v33, 0.0  ;;  %v4070_v22 = vpop.eup %3500 }
 0x347   :  { %v2717_v18 = vsel %vm363_vm4, %v4070_v22, 0.0 }
 0x353   :  { %2223 = vadd.xlane.f32.xlu0 %v2222_v21 }
 0x357   :  { %2718 = vadd.xlane.f32.xlu0 %v2717_v18  ;;  %2227 = vrot.lane.b32.xlu1 %v3799_v20, %s3679_s19 }
 0x36a   :  { %v537_v24 = vpop.xlane.xlu0 %536 }
 0x36b   :  { %3502 = vrcp.f32 %v537_v24 }
 0x36d   :  { %2392 = vrot.lane.b32.xlu0 %v3799_v20, %s3680_s20 }
 0x36e   :  { %v702_v25 = vpop.xlane.xlu1 %701 }
 0x36f   :  { %3504 = vrcp.f32 %v702_v25 }
 0x371   :  { %2557 = vrot.lane.b32.xlu0 %v3799_v20, %s3682_s21 }
 0x372   :  { %v867_v27 = vpop.xlane.xlu0 %866 }
 0x373   :  { %3506 = vrcp.f32 %v867_v27 }
 0x375   :  { %2722 = vrot.lane.b32.xlu0 %v3799_v20, %s3681_s1 }
 0x378   :  { %v3503_v28 = vpop.eup %3502 }
 0x379   :  { %2887 = vrot.lane.b32.xlu0 %v3799_v20, %s3683_s22  ;;  %v539_v29 = vmul.f32 %v3503_v28, %v3991_v61 }
 0x37b   :  { %3284 = vmatmul.mubr.msk.f32.vlgmr.msra.gmra.mxu0 %vm363_vm4, %v539_v29 }
 0x37c   :  { %v3505_v31 = vpop.eup %3504  ;;  %3292 = vmatpush3.msra.mxu0 %v3981_v44  ;;  %3293 = vmatprep.mubr.msk.f32.mxu0 %vm3668_vm2, %v3667_v10  ;;  %v1197_v44 = vpop.xlane.xlu0 %1196 }
 0x37d   :  { %3301 = vmatprep.subr.mxu0 %v3667_v10  ;;  %v704_v32 = vmul.f32 %v3505_v31, %v3995_v1 }
 0x37f   :  { %3294 = vmatmul.mubr.msk.f32.vlgmr.msra.gmra.mxu0 %vm363_vm4, %v704_v32 }
 0x380   :  { %v3507_v62 = vpop.eup %3506  ;;  %3302 = vmatpush3.msra.mxu0 %v3935_v12  ;;  %3303 = vmatprep.mubr.msk.f32.mxu0 %vm3668_vm2, %v3667_v10 }
 0x381   :  { %3311 = vmatprep.subr.mxu0 %v3667_v10  ;;  %v869_v20 = vmul.f32 %v3507_v62, %v3999_v59 }
 0x383   :  { %3304 = vmatmul.mubr.msk.f32.vlgmr.msra.gmra.mxu0 %vm363_vm4, %v869_v20 }
 0x384   :  { %3312 = vmatpush3.msra.mxu0 %v3983_v45  ;;  %3313 = vmatprep.mubr.msk.f32.mxu0 %vm3668_vm2, %v3667_v10 }
 0x385   :  { %3321 = vmatprep.subr.mxu0 %v3667_v10 }
 0x39f   :  { %v1032_v61 = vpop.xlane.xlu1 %1031 }
 0x3a0   :  { %3508 = vrcp.f32 %v1032_v61  ;;  %v3000_v61 = vld [vmem:[#allocation10 + $0x10] sm:$0xff] }
 0x3a1   :  { %3510 = vrcp.f32 %v1197_v44  ;;  %v3001_v44 = vld [vmem:[#allocation10 + $0x18] sm:$0xff] }
 0x3a2   :  { %3426 = vmatprep.subr.mxu1 %v3001_v44 }
 0x3a3   :  { %v1362_v12 = vpop.xlane.xlu1 %1361  ;;  %3427 = vmatpush3.msra.mxu1 %v3001_v44 }
 0x3a4   :  { %3512 = vrcp.f32 %v1362_v12  ;;  %3428 = vmatprep.subr.mxu1 %v3000_v61 }
 0x3a5   :  { %3429 = vmatpush3.msra.mxu1 %v3000_v61 }
 0x3a7   :  { %v1527_v1 = vpop.xlane.xlu1 %1526  ;;  %v1729_v34 = vpop.xlane.xlu0 %1728 }
 0x3a8   :  { %3514 = vrcp.f32 %v1527_v1  ;;  %v2999_v1 = vld [vmem:[#allocation10 + $0x8] sm:$0xff] }
 0x3a9   :  { %3516 = vrcp.f32 %v1729_v34  ;;  %v2998_v34 = vld [vmem:[#allocation10] sm:$0xff]  ;;  %3430 = vmatprep.subr.mxu1 %v2999_v1 }
 0x3aa   :  { %3431 = vmatpush3.msra.mxu1 %v2999_v1 }
 0x3ab   :  { %v1894_v59 = vpop.xlane.xlu1 %1893  ;;  %3432 = vmatprep.subr.mxu1 %v2998_v34 }
 0x3ac   :  { %3518 = vrcp.f32 %v1894_v59  ;;  %3433 = vmatpush3.msra.mxu1 %v2998_v34 }
 0x3ad   :  { %v3509_v5 = vpop.eup %3508 }
 0x3ae   :  { %v1034_v35 = vmul.f32 %v3509_v5, %v4015_v37  ;;  %v3511_v45 = vpop.eup %3510 }
 0x3af   :  { %v1199_v36 = vmul.f32 %v3511_v45, %v4003_v0  ;;  %v2059_v11 = vpop.xlane.xlu1 %2058 }
 0x3b0   :  { %3314 = vmatmul.mubr.msk.f32.vlgmr.msra.gmra.mxu0 %vm363_vm4, %v1034_v35  ;;  %3520 = vrcp.f32 %v2059_v11 }
 0x3b1   :  { %3322 = vmatpush3.msra.mxu0 %v3985_v46  ;;  %3323 = vmatprep.mubr.msk.f32.mxu0 %vm3668_vm2, %v3667_v10  ;;  %v3513_v3 = vpop.eup %3512 }
 0x3b2   :  { %3331 = vmatprep.subr.mxu0 %v3667_v10  ;;  %v1364_v46 = vmul.f32 %v3513_v3, %v4021_v41  ;;  %v2063_v41 = vpop.permute.xlu0 %2062 }
 0x3b3   :  { %v2389_v15 = vpop.xlane.xlu1 %2388 }
 0x3b4   :  { %3324 = vmatmul.mubr.msk.f32.vlgmr.msra.gmra.mxu0 %vm363_vm4, %v1199_v36 }
 0x3b5   :  { %3332 = vmatpush3.msra.mxu0 %v3941_v17  ;;  %3333 = vmatprep.mubr.msk.f32.mxu0 %vm3668_vm2, %v3667_v10  ;;  %v3515_v37 = vpop.eup %3514 }
 0x3b6   :  { %3341 = vmatprep.subr.mxu0 %v3667_v10  ;;  %v1529_v17 = vmul.f32 %v3515_v37, %v4025_v48  ;;  %v3517_v0 = vpop.eup %3516 }
 0x3b7   :  { %v1731_v8 = vmul.f32 %v3517_v0, %v4027_v26  ;;  %v2554_v47 = vpop.xlane.xlu1 %2553 }
 0x3b8   :  { %3334 = vmatmul.mubr.msk.f32.vlgmr.msra.gmra.mxu0 %vm363_vm4, %v1364_v46 }
 0x3b9   :  { %3342 = vmatpush3.msra.mxu0 %v4007_v6  ;;  %3343 = vmatprep.mubr.msk.f32.mxu0 %vm3668_vm2, %v3667_v10  ;;  %v3519_v6 = vpop.eup %3518 }
 0x3ba   :  { %3351 = vmatprep.subr.mxu0 %v3667_v10  ;;  %v1896_v39 = vmul.f32 %v3519_v6, %v4033_v50 }
 0x3bc   :  { %3344 = vmatmul.mubr.msk.f32.vlgmr.msra.gmra.mxu0 %vm363_vm4, %v1529_v17 }
 0x3bd   :  { %3352 = vmatpush3.msra.mxu0 %v4076_v30  ;;  %3353 = vmatprep.mubr.msk.f32.mxu0 %vm3668_vm2, %v3667_v10  ;;  %v3521_v40 = vpop.eup %3520 }
 0x3be   :  { %3361 = vmatprep.subr.mxu0 %v3667_v10  ;;  %v2061_v42 = vmul.f32 %v3521_v40, %v4037_v54 }
 0x3c0   :  { %3354 = vmatmul.mubr.msk.f32.vlgmr.msra.gmra.mxu0 %vm363_vm4, %v1731_v8 }
 0x3c1   :  { %3362 = vmatpush3.msra.mxu0 %v4055_v43  ;;  %3363 = vmatprep.mubr.msk.f32.mxu0 %vm3668_vm2, %v3667_v10 }
 0x3c2   :  { %3371 = vmatprep.subr.mxu0 %v3667_v10 }
 0x3c4   :  { %3364 = vmatmul.mubr.msk.f32.vlgmr.msra.gmra.mxu0 %vm363_vm4, %v1896_v39 }
 0x3c5   :  { %3372 = vmatpush3.msra.mxu0 %v2063_v41  ;;  %3373 = vmatprep.mubr.msk.f32.mxu0 %vm3668_vm2, %v3667_v10 }
 0x3c6   :  { %3381 = vmatprep.subr.mxu0 %v3667_v10 }
 0x3c8   :  { %3374 = vmatmul.mubr.msk.f32.vlgmr.msra.gmra.mxu0 %vm363_vm4, %v2061_v42 }
 0x3c9   :  { %3383 = vmatprep.mubr.msk.f32.mxu0 %vm3668_vm2, %v3667_v10 }
 0x3cf   :  { %v2884_v48 = vpop.xlane.xlu1 %2883 }
 0x3d3   :  { %v2228_v26 = vpop.permute.xlu1 %2227 }
 0x3d4   :  { %3382 = vmatpush3.msra.mxu0 %v2228_v26 }
 0x3d5   :  { %3391 = vmatprep.subr.mxu0 %v3667_v10 }
 0x3dc   :  { %v2224_v49 = vpop.xlane.xlu0 %2223 }
 0x3dd   :  { %3522 = vrcp.f32 %v2224_v49 }
 0x3de   :  { %3524 = vrcp.f32 %v2389_v15 }
 0x3df   :  { %3526 = vrcp.f32 %v2554_v47 }
 0x3e0   :  { %v2719_v23 = vpop.xlane.xlu0 %2718 }
 0x3e1   :  { %3528 = vrcp.f32 %v2719_v23 }
 0x3e2   :  { %3530 = vrcp.f32 %v2884_v48 }
 0x3e3   :  { %v4144_v50 = vpop.f32.mrf.mxu0 }
 0x3e4   :  { %v2393_v52 = vpop.permute.xlu0 %2392 }
 0x3e5   :  { %v3275_v51 = vpop.f32.mrf.mxu0 }
 0x3e8   :  { %v2558_v60 = vpop.permute.xlu0 %2557 }
 0x3ea   :  { %v3523_v54 = vpop.eup %3522 }
 0x3eb   :  { %v2226_v55 = vmul.f32 %v3523_v54, %v4066_v33  ;;  %v3525_v57 = vpop.eup %3524 }
 0x3ec   :  { %v2391_v38 = vmul.f32 %v3525_v57, %v4047_v58  ;;  %v3527_v43 = vpop.eup %3526  ;;  %v2723_v53 = vpop.permute.xlu0 %2722 }
 0x3ed   :  { %3384 = vmatmul.mubr.msk.f32.vlgmr.msra.gmra.mxu0 %vm363_vm4, %v2226_v55  ;;  %v2556_v56 = vmul.f32 %v3527_v43, %v4051_v63 }
 0x3ee   :  { %3392 = vmatpush3.msra.mxu0 %v2393_v52  ;;  %3393 = vmatprep.mubr.msk.f32.mxu0 %vm3668_vm2, %v3667_v10  ;;  %v3529_v2 = vpop.eup %3528 }
 0x3ef   :  { %3401 = vmatprep.subr.mxu0 %v3667_v10  ;;  %v2721_v58 = vmul.f32 %v3529_v2, %v4070_v22  ;;  %v3531_v4 = vpop.eup %3530 }
 0x3f0   :  { %v2888_v7 = vpop.permute.xlu0 %2887  ;;  %v2886_v63 = vmul.f32 %v3531_v4, %v4062_v16 }
 0x3f1   :  { %3394 = vmatmul.mubr.msk.f32.vlgmr.msra.gmra.mxu0 %vm363_vm4, %v2391_v38 }
 0x3f2   :  { %3402 = vmatpush3.msra.mxu0 %v2558_v60  ;;  %3403 = vmatprep.mubr.msk.f32.mxu0 %vm3668_vm2, %v3667_v10 }
 0x3f3   :  { %3411 = vmatprep.subr.mxu0 %v3667_v10 }
 0x3f5   :  { %3404 = vmatmul.mubr.msk.f32.vlgmr.msra.gmra.mxu0 %vm363_vm4, %v2556_v56 }
 0x3f6   :  { %3412 = vmatpush3.msra.mxu0 %v2723_v53  ;;  %3413 = vmatprep.mubr.msk.f32.mxu0 %vm3668_vm2, %v3667_v10 }
 0x3f7   :  { %3421 = vmatprep.subr.mxu0 %v3667_v10 }
 0x3f9   :  { %3414 = vmatmul.mubr.msk.f32.vlgmr.msra.gmra.mxu0 %vm363_vm4, %v2721_v58 }
 0x3fa   :  { %3422 = vmatpush3.msra.mxu0 %v2888_v7  ;;  %3423 = vmatprep.mubr.msk.f32.mxu0 %vm3668_vm2, %v3667_v10  ;;  %v3165_v7 = vld [vmem:[%s4214_s7] ss:$0 sm:$0xff] }
 0x3fd   :  { %3424 = vmatmul.mubr.msk.f32.vlgmr.msra.gmra.mxu0 %vm363_vm4, %v2886_v63 }
 0x43b   :  { %v612_v9 = vpop.f32.mrf.mxu0 }
 0x43c   :  { %1607 = vrot.lane.b32.xlu0 %v612_v9, %s3684_s4 }
 0x43d   :  { %v3285_v13 = vpop.f32.mrf.mxu0 }
 0x43f   :  { %v777_v14 = vpop.f32.mrf.mxu0 }
 0x440   :  { %1611 = vrot.lane.b32.xlu1 %v777_v14, %s3663_s11 }
 0x441   :  { %v3295_v19 = vpop.f32.mrf.mxu0 }
 0x443   :  { %v942_v33 = vpop.f32.mrf.mxu0 }
 0x444   :  { %1615 = vrot.lane.b32.xlu1 %v942_v33, %s3685_s23 }
 0x445   :  { %v3305_v21 = vpop.f32.mrf.mxu0 }
 0x470   :  { %v1107_v22 = vpop.f32.mrf.mxu0 }
 0x471   :  { %1619 = vrot.lane.b32.xlu1 %v1107_v22, %s3686_s24 }
 0x472   :  { %v3315_v10 = vpop.f32.mrf.mxu0 }
 0x474   :  { %v1272_v16 = vpop.f32.mrf.mxu0 }
 0x475   :  { %1623 = vrot.lane.b32.xlu1 %v1272_v16, %s3687_s25 }
 0x476   :  { %v3325_v18 = vpop.f32.mrf.mxu0 }
 0x478   :  { %v1437_v30 = vpop.f32.mrf.mxu0 }
 0x479   :  { %1627 = vrot.lane.b32.xlu1 %v1437_v30, %s3688_s26 }
 0x47a   :  { %v3335_v24 = vpop.f32.mrf.mxu0 }
 0x47c   :  { %v1602_v25 = vpop.f32.mrf.mxu0 }
 0x47d   :  { %1631 = vrot.lane.b32.xlu1 %v1602_v25, %s3689_s27 }
 0x47e   :  { %v3345_v27 = vpop.f32.mrf.mxu0 }
 0x480   :  { %v1804_v28 = vpop.f32.mrf.mxu0 }
 0x482   :  { %v3355_v29 = vpop.f32.mrf.mxu0 }
 0x484   :  { %v1969_v31 = vpop.f32.mrf.mxu0 }
 0x485   :  { %2964 = vrot.lane.b32.xlu0 %v1969_v31, %s3684_s4 }
 0x486   :  { %v3365_v32 = vpop.f32.mrf.mxu0 }
 0x488   :  { %v2134_v62 = vpop.f32.mrf.mxu0 }
 0x489   :  { %2968 = vrot.lane.b32.xlu0 %v2134_v62, %s3663_s11 }
 0x48a   :  { %v3375_v20 = vpop.f32.mrf.mxu0 }
 0x4ad   :  { %v2299_v12 = vpop.f32.mrf.mxu0 }
 0x4ae   :  { %2972 = vrot.lane.b32.xlu0 %v2299_v12, %s3685_s23  ;;  %v1608_v6 = vpop.permute.xlu0 %1607 }
 0x4af   :  { %v3385_v5 = vpop.f32.mrf.mxu0  ;;  %v1634_v40 = vsel %vm286_vm3, %v4144_v50, %v1608_v6 }
 0x4b1   :  { %v2464_v59 = vpop.f32.mrf.mxu0 }
 0x4b2   :  { %2976 = vrot.lane.b32.xlu0 %v2464_v59, %s3686_s24  ;;  %v1612_v17 = vpop.permute.xlu1 %1611 }
 0x4b3   :  { %v3395_v35 = vpop.f32.mrf.mxu0  ;;  %v1635_v41 = vsel %vm363_vm4, %v1634_v40, %v1612_v17 }
 0x4b5   :  { %v2629_v45 = vpop.f32.mrf.mxu0 }
 0x4b6   :  { %2980 = vrot.lane.b32.xlu0 %v2629_v45, %s3687_s25  ;;  %v1616_v0 = vpop.permute.xlu1 %1615 }
 0x4b7   :  { %v3405_v36 = vpop.f32.mrf.mxu0  ;;  %v1637_v42 = vsel %vm1636_vm5, %v1635_v41, %v1616_v0 }
 0x4b9   :  { %v2794_v3 = vpop.f32.mrf.mxu0 }
 0x4ba   :  { %2984 = vrot.lane.b32.xlu0 %v2794_v3, %s3688_s26 }
 0x4bb   :  { %v3415_v11 = vpop.f32.mrf.mxu0 }
 0x4bd   :  { %v2959_v46 = vpop.f32.mrf.mxu0 }
 0x4be   :  { %2988 = vrot.lane.b32.xlu1 %v2959_v46, %s3689_s27 }
 0x4bf   :  { %v3425_v37 = vpop.f32.mrf.mxu0 }
 0x4e3   :  { %v1620_v8 = vpop.permute.xlu1 %1619 }
 0x4e4   :  { %v1638_v47 = vsel %vm109_vm1, %v1637_v42, %v1620_v8 }
 0x4e7   :  { %v1624_v39 = vpop.permute.xlu1 %1623 }
 0x4e8   :  { %v1640_v48 = vsel %vm1639_vm6, %v1638_v47, %v1624_v39 }
 0x4eb   :  { %v1628_v15 = vpop.permute.xlu1 %1627 }
 0x4ec   :  { %v1642_v26 = vsel %vm1641_vm7, %v1640_v48, %v1628_v15 }
 0x4ef   :  { %v1632_v49 = vpop.permute.xlu1 %1631 }
 0x4f0   :  { %v1644_v23 = vsel %vm1643_vm8, %v1642_v26, %v1632_v49 }
 0x4f1   :  { %3434 = vmatprep.mubr.msk.f32.mxu1 %vm204_vm0, %v1644_v23 }
 0x4f7   :  { %v2965_v50 = vpop.permute.xlu0 %2964 }
 0x4f8   :  { %v2991_v57 = vsel %vm286_vm3, %v1804_v28, %v2965_v50 }
 0x4fb   :  { %v2969_v51 = vpop.permute.xlu0 %2968 }
 0x4fc   :  { %v2992_v60 = vsel %vm363_vm4, %v2991_v57, %v2969_v51 }
 0x520   :  { %v2973_v52 = vpop.permute.xlu0 %2972 }
 0x521   :  { %v2993_v38 = vsel %vm1636_vm5, %v2992_v60, %v2973_v52 }
 0x524   :  { %v2977_v54 = vpop.permute.xlu0 %2976 }
 0x525   :  { %v2994_v53 = vsel %vm109_vm1, %v2993_v38, %v2977_v54 }
 0x528   :  { %v2981_v55 = vpop.permute.xlu0 %2980 }
 0x529   :  { %v2995_v56 = vsel %vm1639_vm6, %v2994_v53, %v2981_v55 }
 0x52c   :  { %v2985_v43 = vpop.permute.xlu0 %2984 }
 0x52d   :  { %v2996_v2 = vsel %vm1641_vm7, %v2995_v56, %v2985_v43 }
 0x530   :  { %v2989_v58 = vpop.permute.xlu1 %2988 }
 0x531   :  { %v2997_v4 = vsel %vm1643_vm8, %v2996_v2, %v2989_v58 }
 0x532   :  { %3435 = vmatmul.mubr.msk.f32.vlgmr.msra.gmra.mxu1 %vm204_vm0, %v2997_v4 }
 0x5f2   :  { %v3436_v63 = vpop.f32.mrf.mxu1 }
 0x5f3   :  { %v3087_v9 = vadd.f32 %v3436_v63, %v3165_v7 }
 0x5f4   :  { %v3081_v13 = vpop.f32.mrf.mxu1 }
 0x5f5   :  { %3091 = vst.msk [vmem:[#allocation11 + $0x8] sm:$0xff] %vm204_vm0, %v3087_v9  ;;  %v3082_v14 = vadd.f32 %v3165_v7, %v3081_v13 }
 0x5f7   :  { %3090 = vst.msk [vmem:[#allocation11] sm:$0xff] %vm204_vm0, %v3082_v14 }
 0x5f8   :  { %3643 = shalt.err (!%p3640_p1)
}
 0x5f9   :  { %3103 = dma.vmem_to_hbm [thread:$0]  %s3098_s6, 256, %s4215_s8, [#allocation4], %s3662_s10, %s3662_s10, %s3663_s11  }
 0x5fa   :  { %3658 = dma.done.wait [#allocation4], 256  }
 0x5fb   :  { %3659 = vsyncadd [#allocation4], 4294967040 }
 0x5fc   :  { %3107 = vsyncpa [#allocation3], 1 }
 0x5fd   :  { %3108 = vsyncpa [#allocation6], 1 }
 0x5fe   :  { %3109 = vsyncpa [#allocation9], 1 }
 0x5ff   :  { %3110 = vsyncpa [#allocation4], 1 }

</bundles_post_ra>
